<compile_context>
chip_gen: v7x
topology: tpu7x:2x2x1
jax: 0.10.0
libtpu: 0.0.40
codegen_flags: <defaults>
</compile_context>

<pallas_src>
import functools
import math

import jax
import jax.numpy as jnp
from jax.experimental import pallas as pl
from jax.experimental.pallas import tpu as pltpu


_TM_MAX = 256
_TN_MAX = 256
_TK_MAX = 512
_VMEM_LIMIT = 32 * 1024 * 1024  # explicit scoped-VMEM budget (safe on v5e/v6e/v7x)


def _round_up(x, m):
    return ((x + m - 1) // m) * m


def _elu_f32(x):
    # ELU(alpha=1); exp only evaluated on the non-positive side (no overflow).
    return jnp.where(x > 0, x, jnp.exp(jnp.minimum(x, 0.0)) - 1.0)


# --------------------------------------------------------------------------
# Tiled matmul kernel:  out = (elu(A) if apply_elu else A) @ W + bias
# --------------------------------------------------------------------------
def _mm_kernel(a_ref, w_ref, b_ref, o_ref, acc_ref, *, apply_elu):
    kk = pl.program_id(2)

    @pl.when(kk == 0)
    def _():
        acc_ref[...] = jnp.zeros_like(acc_ref)

    a = a_ref[...]
    if apply_elu:
        a = _elu_f32(a.astype(jnp.float32)).astype(jnp.bfloat16)
    acc_ref[...] += jnp.dot(a, w_ref[...], preferred_element_type=jnp.float32)

    @pl.when(kk == pl.num_programs(2) - 1)
    def _():
        o_ref[...] = (acc_ref[...] + b_ref[...]).astype(o_ref.dtype)


def matmul_bias_act(a, w, bias, *, apply_elu=False):
    """C = act(A) @ W + bias.  A:(M,K) W:(K,N) bias:(N,).  bf16 MXU, f32 acc."""
    m, k = a.shape
    n = w.shape[1]
    a = a.astype(jnp.bfloat16)
    w = w.astype(jnp.bfloat16)
    bias = bias.astype(jnp.float32).reshape(1, n)

    mp = _round_up(m, 8)
    tm = mp if mp <= _TM_MAX else _TM_MAX
    mp = _round_up(m, tm)
    kp = _round_up(k, 128)
    tk = kp if kp <= _TK_MAX else _TK_MAX
    kp = _round_up(k, tk)
    np_ = _round_up(n, 128)
    tn = np_ if np_ <= _TN_MAX else _TN_MAX
    np_ = _round_up(n, tn)

    a = jnp.pad(a, ((0, mp - m), (0, kp - k)))
    w = jnp.pad(w, ((0, kp - k), (0, np_ - n)))
    bias = jnp.pad(bias, ((0, 0), (0, np_ - n)))

    out = pl.pallas_call(
        functools.partial(_mm_kernel, apply_elu=apply_elu),
        out_shape=jax.ShapeDtypeStruct((mp, np_), jnp.float32),
        grid=(mp // tm, np_ // tn, kp // tk),
        in_specs=[
            pl.BlockSpec((tm, tk), lambda i, j, kk: (i, kk)),
            pl.BlockSpec((tk, tn), lambda i, j, kk: (kk, j)),
            pl.BlockSpec((1, tn), lambda i, j, kk: (0, j)),
        ],
        out_specs=pl.BlockSpec((tm, tn), lambda i, j, kk: (i, j)),
        scratch_shapes=[pltpu.VMEM((tm, tn), jnp.float32)],
        compiler_params=pltpu.CompilerParams(
            dimension_semantics=("parallel", "parallel", "arbitrary"),
            vmem_limit_bytes=_VMEM_LIMIT,
        ),
    )(a, w, bias)
    return out[:m, :n]


# --------------------------------------------------------------------------
# Fused residual-block tail:  out = elu(y) @ W2 + x @ Wsc + (b2 + bsc)
# (ELU + 1x1 conv2 + 1x1 shortcut + biases + residual add in one kernel)
# --------------------------------------------------------------------------
def _res_tail_kernel(y_ref, x_ref, w2_ref, wsc_ref, b_ref, o_ref):
    y = _elu_f32(y_ref[...].astype(jnp.float32)).astype(jnp.bfloat16)
    o_ref[...] = (
        jnp.dot(y, w2_ref[...], preferred_element_type=jnp.float32)
        + jnp.dot(x_ref[...], wsc_ref[...], preferred_element_type=jnp.float32)
        + b_ref[...]
    )


def res_tail_fused(y_hidden, x_flat, w2, wsc, bias):
    m, kh = y_hidden.shape
    kd = x_flat.shape[1]
    n = w2.shape[1]

    mp = _round_up(m, 8)
    tm = mp if mp <= _TM_MAX else _TM_MAX
    mp = _round_up(m, tm)
    khp = _round_up(kh, 128)
    kdp = _round_up(kd, 128)
    np_ = _round_up(n, 128)

    y = jnp.pad(y_hidden.astype(jnp.bfloat16), ((0, mp - m), (0, khp - kh)))
    x = jnp.pad(x_flat.astype(jnp.bfloat16), ((0, mp - m), (0, kdp - kd)))
    w2p = jnp.pad(w2.astype(jnp.bfloat16), ((0, khp - kh), (0, np_ - n)))
    wscp = jnp.pad(wsc.astype(jnp.bfloat16), ((0, kdp - kd), (0, np_ - n)))
    bp = jnp.pad(bias.astype(jnp.float32).reshape(1, n), ((0, 0), (0, np_ - n)))

    out = pl.pallas_call(
        _res_tail_kernel,
        out_shape=jax.ShapeDtypeStruct((mp, np_), jnp.float32),
        grid=(mp // tm,),
        in_specs=[
            pl.BlockSpec((tm, khp), lambda i: (i, 0)),
            pl.BlockSpec((tm, kdp), lambda i: (i, 0)),
            pl.BlockSpec((khp, np_), lambda i: (0, 0)),   # resident across grid
            pl.BlockSpec((kdp, np_), lambda i: (0, 0)),   # resident across grid
            pl.BlockSpec((1, np_), lambda i: (0, 0)),
        ],
        out_specs=pl.BlockSpec((tm, np_), lambda i: (i, 0)),
        compiler_params=pltpu.CompilerParams(
            dimension_semantics=("parallel",),
            vmem_limit_bytes=_VMEM_LIMIT,
        ),
    )(y, x, w2p, wscp, bp)
    return out[:m, :n]


# --------------------------------------------------------------------------
# SLSTM recurrence: single kernel over the whole sequence (grid over T),
# h/c state + combined recurrent weight resident in VMEM.
# --------------------------------------------------------------------------
def _lstm_seq_kernel(xp_ref, whh_ref, hout_ref, h_scr, c_scr, *, hidden):
    t = pl.program_id(0)

    @pl.when(t == 0)
    def _():
        h_scr[...] = jnp.zeros_like(h_scr)
        c_scr[...] = jnp.zeros_like(c_scr)

    h = h_scr[...]
    # One wide (B,H) x (H,4H) matmul; gates in PyTorch order i, f, g, o.
    gates = xp_ref[0] + jnp.dot(h, whh_ref[...], preferred_element_type=jnp.float32)
    i_g = jax.nn.sigmoid(gates[:, 0 * hidden:1 * hidden])
    f_g = jax.nn.sigmoid(gates[:, 1 * hidden:2 * hidden])
    g_g = jnp.tanh(gates[:, 2 * hidden:3 * hidden])
    o_g = jax.nn.sigmoid(gates[:, 3 * hidden:4 * hidden])
    c = f_g * c_scr[...] + i_g * g_g
    h_new = o_g * jnp.tanh(c)
    c_scr[...] = c
    h_scr[...] = h_new
    hout_ref[0] = h_new


def lstm_layer(xp, whh_t):
    """xp: (T, B, 4H) input projections (bias already added); whh_t: (H, 4H)."""
    t_len, bsz, four_h = xp.shape
    hidden = four_h // 4
    return pl.pallas_call(
        functools.partial(_lstm_seq_kernel, hidden=hidden),
        out_shape=jax.ShapeDtypeStruct((t_len, bsz, hidden), jnp.float32),
        grid=(t_len,),
        in_specs=[
            pl.BlockSpec((1, bsz, four_h), lambda t: (t, 0, 0)),
            pl.BlockSpec((hidden, four_h), lambda t: (0, 0)),   # stays in VMEM
        ],
        out_specs=pl.BlockSpec((1, bsz, hidden), lambda t: (t, 0, 0)),
        scratch_shapes=[
            pltpu.VMEM((bsz, hidden), jnp.float32),   # h state
            pltpu.VMEM((bsz, hidden), jnp.float32),   # c state
        ],
        compiler_params=pltpu.CompilerParams(
            dimension_semantics=("arbitrary",),
            vmem_limit_bytes=_VMEM_LIMIT,
        ),
    )(xp.astype(jnp.float32), whh_t.astype(jnp.float32))


def slstm(layers, x_btc):
    # x_btc: (B, T, C) channels-last -> (T, B, C)
    x_in = jnp.transpose(x_btc, (1, 0, 2)).astype(jnp.float32)
    t_len, bsz, hidden = x_in.shape
    h_seq = x_in
    for lp in layers:
        bias = lp["b_ih"] + lp["b_hh"]
        xp = matmul_bias_act(h_seq.reshape(t_len * bsz, hidden), lp["w_ih"].T, bias)
        xp = xp.reshape(t_len, bsz, 4 * hidden)
        h_seq = lstm_layer(xp, lp["w_hh"].T)
    y = h_seq + x_in                              # skip connection
    return jnp.transpose(y, (1, 0, 2))            # (B, T, C)


# --------------------------------------------------------------------------
# Padding helpers (plain-JAX glue; mirrors pad2d / get_extra_padding_for_conv1d)
# --------------------------------------------------------------------------
def _get_extra_padding_for_conv1d(length, kernel_size, stride, padding_total):
    n_frames = (length - kernel_size + padding_total) / stride + 1
    ideal_length = (math.ceil(n_frames) - 1) * stride + (kernel_size - padding_total)
    return int(ideal_length - length)


def pad2d_cl(x, padding_time, padding_freq, mode="reflect"):
    # x: (B, F, T, C) channels-last
    f_len, t_len = x.shape[1], x.shape[2]
    assert min(padding_time) >= 0 and min(padding_freq) >= 0
    if mode == "reflect":
        max_t, max_f = max(padding_time), max(padding_freq)
        extra_t = max_t - t_len + 1 if t_len <= max_t else 0
        extra_f = max_f - f_len + 1 if f_len <= max_f else 0
        x = jnp.pad(x, ((0, 0), (0, extra_f), (0, extra_t), (0, 0)))
        padded = jnp.pad(x, ((0, 0), tuple(padding_freq), tuple(padding_time), (0, 0)),
                         mode="reflect")
        f_end = padded.shape[1] - extra_f
        t_end = padded.shape[2] - extra_t
        return padded[:, :f_end, :t_end, :]
    return jnp.pad(x, ((0, 0), tuple(padding_freq), tuple(padding_time), (0, 0)))


def pad1d_cl(x, paddings, mode="reflect"):
    # x: (B, T, C)
    length = x.shape[1]
    p_left, p_right = paddings
    if mode == "reflect":
        max_pad = max(p_left, p_right)
        extra = max_pad - length + 1 if length <= max_pad else 0
        x = jnp.pad(x, ((0, 0), (0, extra), (0, 0)))
        padded = jnp.pad(x, ((0, 0), (p_left, p_right), (0, 0)), mode="reflect")
        end = padded.shape[1] - extra
        return padded[:, :end, :]
    return jnp.pad(x, ((0, 0), (p_left, p_right), (0, 0)))


# --------------------------------------------------------------------------
# Convolutions: channels-last im2col feeding the tiled Pallas matmul
# --------------------------------------------------------------------------
def conv2d_cl(x, w, b, stride=(1, 1), dilation=(1, 1), apply_elu=False):
    # x: (B, Fi, Ti, Cin) already padded (valid conv); w: (Cout, Cin, kf, kt)
    bsz, fi, ti, cin = x.shape
    cout, _, kf, kt = w.shape
    sf, st = stride
    df, dt = dilation
    fo = (fi - (kf - 1) * df - 1) // sf + 1
    to = (ti - (kt - 1) * dt - 1) // st + 1
    cols = []
    for i in range(kf):
        for j in range(kt):
            cols.append(x[:, i * df: i * df + (fo - 1) * sf + 1: sf,
                             j * dt: j * dt + (to - 1) * st + 1: st, :])
    patches = jnp.stack(cols, axis=3)                       # (B, Fo, To, kf*kt, Cin)
    patches = patches.reshape(bsz * fo * to, kf * kt * cin)
    wmat = jnp.transpose(w, (2, 3, 1, 0)).reshape(kf * kt * cin, cout)
    out = matmul_bias_act(patches, wmat, b, apply_elu=apply_elu)
    return out.reshape(bsz, fo, to, cout)


def conv1d_cl(x, w, b, stride=1, dilation=1, apply_elu=False):
    # x: (B, Ti, Cin) already padded; w: (Cout, Cin, k)
    bsz, ti, cin = x.shape
    cout, _, k = w.shape
    to = (ti - (k - 1) * dilation - 1) // stride + 1
    cols = [x[:, j * dilation: j * dilation + (to - 1) * stride + 1: stride, :]
            for j in range(k)]
    patches = jnp.stack(cols, axis=2).reshape(bsz * to, k * cin)
    wmat = jnp.transpose(w, (2, 1, 0)).reshape(k * cin, cout)
    out = matmul_bias_act(patches, wmat, b, apply_elu=apply_elu)
    return out.reshape(bsz, to, cout)


def sconv2d_cl(x, p, kernel_size, stride=(1, 1), dilation=(1, 1),
               causal=False, pad_mode="reflect", apply_elu=False):
    """SConv2d padding semantics + NormConv2d (weight_norm ~ Identity)."""
    assert x.ndim == 4
    t_len = x.shape[2]
    padding_total, extra_padding = [], []
    for i, (k, s, d) in enumerate(zip(kernel_size, stride, dilation)):
        pt = (k - 1) * d - (s - 1)
        ep = 0 if i == 0 else _get_extra_padding_for_conv1d(t_len, k, s, pt)
        padding_total.append(pt)
        extra_padding.append(ep)
    freq_after = padding_total[0] // 2
    freq_before = padding_total[0] - freq_after + extra_padding[0]
    if causal:
        time_after = extra_padding[1]
        time_before = padding_total[1]
    else:
        time_after = padding_total[1] // 2
        time_before = padding_total[1] - time_after + extra_padding[1]
    x = pad2d_cl(x, (time_before, time_after), (freq_before, freq_after), mode=pad_mode)
    return conv2d_cl(x, p["w"], p["b"], stride, dilation, apply_elu=apply_elu)


def sconv1d_cl(x, p, kernel_size, stride=1, dilation=1, causal=False,
               pad_mode="reflect", apply_elu=False):
    t_len = x.shape[1]
    k_eff = (kernel_size - 1) * dilation + 1
    padding_total = k_eff - stride
    extra = _get_extra_padding_for_conv1d(t_len, k_eff, stride, padding_total)
    if causal:
        x = pad1d_cl(x, (padding_total, extra), mode=pad_mode)
    else:
        p_right = padding_total // 2
        p_left = padding_total - p_right
        x = pad1d_cl(x, (p_left, p_right + extra), mode=pad_mode)
    return conv1d_cl(x, p["w"], p["b"], stride, dilation, apply_elu=apply_elu)


# --------------------------------------------------------------------------
# Parameter init (deterministic; mimics PyTorch default Conv/LSTM init)
# --------------------------------------------------------------------------
def _conv_init(key, shape):
    fan_in = int(math.prod(shape[1:]))
    bound = 1.0 / math.sqrt(fan_in)
    kw, kb = jax.random.split(key)
    return {
        "w": jax.random.uniform(kw, shape, jnp.float32, -bound, bound),
        "b": jax.random.uniform(kb, (shape[0],), jnp.float32, -bound, bound),
    }


def init_seanet_encoder(
    key, channels=1, dimension=16, n_filters=8, n_residual_layers=1,
    ratios=((2, 1), (2, 2)), kernel_size=3, last_kernel_size=3,
    residual_kernel_size=3, dilation_base=2, compress=2, lstm=2,
):
    ratios = list(reversed([tuple(r) for r in ratios]))     # encoder reverses ratios
    keys = iter(jax.random.split(key, 128))
    params = {}
    mult = 1
    params["conv_in"] = _conv_init(
        next(keys), (mult * n_filters, channels, kernel_size, kernel_size))
    stages = []
    for (fr, tr) in ratios:
        dim = mult * n_filters
        hidden = dim // compress
        res = []
        for _j in range(n_residual_layers):
            res.append({
                "conv1": _conv_init(
                    next(keys),
                    (hidden, dim, residual_kernel_size, residual_kernel_size)),
                "conv2": _conv_init(next(keys), (dim, hidden, 1, 1)),
                # true_skip=False (encoder default) -> 1x1 conv shortcut
                "shortcut": _conv_init(next(keys), (dim, dim, 1, 1)),
            })
        stages.append({
            "res": res,
            "down": _conv_init(next(keys), (dim * 2, dim, fr * 2, tr * 2)),
        })
        mult *= 2
    params["stages"] = stages

    hdim = mult * n_filters
    bound = 1.0 / math.sqrt(hdim)
    lstm_layers = []
    for _ in range(lstm):
        k1, k2, k3, k4 = jax.random.split(next(keys), 4)
        lstm_layers.append({
            "w_ih": jax.random.uniform(k1, (4 * hdim, hdim), jnp.float32, -bound, bound),
            "w_hh": jax.random.uniform(k2, (4 * hdim, hdim), jnp.float32, -bound, bound),
            "b_ih": jax.random.uniform(k3, (4 * hdim,), jnp.float32, -bound, bound),
            "b_hh": jax.random.uniform(k4, (4 * hdim,), jnp.float32, -bound, bound),
        })
    params["lstm"] = lstm_layers
    params["conv_out"] = _conv_init(next(keys), (dimension, hdim, last_kernel_size))

    cfg = dict(kernel_size=kernel_size, last_kernel_size=last_kernel_size,
               residual_kernel_size=residual_kernel_size,
               dilation_base=dilation_base, ratios=ratios)
    return params, cfg


# --------------------------------------------------------------------------
# Full SEANetEncoder2d forward (cfg is static / closed over by jit)
# --------------------------------------------------------------------------
def seanet_encoder2d_forward(params, x, cfg, pad_mode="reflect", causal=False):
    # Input (B, F, T) or (B, C, F, T) -> internal channels-last (B, F, T, C).
    if x.ndim == 3:
        x = x[:, :, :, None]
    else:
        x = jnp.transpose(x, (0, 2, 3, 1))
    ks = cfg["kernel_size"]
    rks = cfg["residual_kernel_size"]
    lks = cfg["last_kernel_size"]

    x = sconv2d_cl(x, params["conv_in"], (ks, ks), causal=causal, pad_mode=pad_mode)
    for stage, (fr, tr) in zip(params["stages"], cfg["ratios"]):
        for j, blk in enumerate(stage["res"]):
            dil = (1, cfg["dilation_base"] ** j)
            # conv1 with fused ELU prologue (ELU commutes with pad + im2col).
            y = sconv2d_cl(x, blk["conv1"], (rks, rks), dilation=dil,
                           causal=causal, pad_mode=pad_mode, apply_elu=True)
            # Fused tail: elu(y)@W_conv2 + x@W_shortcut + biases == shortcut(x)+block(x)
            b_, f_, t_, c_dim = x.shape
            c_hid = y.shape[-1]
            w2 = blk["conv2"]["w"].reshape(c_dim, c_hid).T        # (hidden, dim)
            wsc = blk["shortcut"]["w"].reshape(c_dim, c_dim).T    # (dim, dim)
            out = res_tail_fused(
                y.reshape(b_ * f_ * t_, c_hid),
                x.reshape(b_ * f_ * t_, c_dim),
                w2, wsc, blk["conv2"]["b"] + blk["shortcut"]["b"])
            x = out.reshape(b_, f_, t_, c_dim)
        # Downsampling conv with fused ELU prologue.
        x = sconv2d_cl(x, stage["down"], (2 * fr, 2 * tr), stride=(fr, tr),
                       causal=causal, pad_mode=pad_mode, apply_elu=True)

    # ReshapeModule(dim=2): squeeze the (now size-1) frequency axis.
    assert x.shape[1] == 1, x.shape
    x = x[:, 0]                                   # (B, T, C)
    x = slstm(params["lstm"], x)                  # (B, T, C)
    # Final ELU fused into conv_out's matmul prologue.
    x = sconv1d_cl(x, params["conv_out"], lks, causal=causal,
                   pad_mode=pad_mode, apply_elu=True)
    return jnp.transpose(x, (0, 2, 1))            # (B, C, T) to match PyTorch


# --------------------------------------------------------------------------
if __name__ == "__main__":
    key = jax.random.PRNGKey(0)
    pkey, xkey = jax.random.split(key)

    # Small config: channels=1, dimension=16, n_filters=8, ratios=[(2,1),(2,2)]
    # => total frequency downsample 2*2=4, time downsample 2.
    params, cfg = init_seanet_encoder(pkey)

    # Input (B, F, T) = (2, 4, 8); F equals the total freq ratio so the freq
    # axis collapses to 1 before the squeeze (as the module's forward implies).
    x = jax.random.normal(xkey, (2, 4, 8), jnp.float32)

    fwd = jax.jit(functools.partial(seanet_encoder2d_forward, cfg=cfg))
    y = jax.block_until_ready(fwd(params, x))
    assert y.shape == (2, 16, 4), y.shape
    assert bool(jnp.all(jnp.isfinite(y)))
    print("KERNEL_OK")
</pallas_src>

<mosaic_0001>
module attributes {stable_mosaic.version = 11 : i64} {
  func.func @_mm_kernel(%arg0: i32, %arg1: i32, %arg2: i32, %arg3: memref<64x128xbf16, #tpu.memory_space<vmem>>, %arg4: memref<128x128xbf16, #tpu.memory_space<vmem>>, %arg5: memref<1x128xf32, #tpu.memory_space<vmem>>, %arg6: memref<64x128xf32, #tpu.memory_space<vmem>>, %arg7: memref<64x128xf32, #tpu.memory_space<vmem>>) attributes {dimension_semantics = [#tpu.dimension_semantics<parallel>, #tpu.dimension_semantics<parallel>, #tpu.dimension_semantics<arbitrary>], iteration_bounds = array<i64: 1, 1, 1>, scalar_prefetch = 0 : i64, scratch_operands = 1 : i64, tpu.core_type = #tpu.core_type<tc>, window_params = [{transform_indices = @transform_0, window_bounds = array<i64: 64, 128>}, {transform_indices = @transform_1, window_bounds = array<i64: 128, 128>}, {transform_indices = @transform_2, window_bounds = array<i64: 1, 128>}, {transform_indices = @transform_3, window_bounds = array<i64: 64, 128>}]} {
    %c0_i32 = arith.constant 0 : i32
    %0 = arith.cmpi eq, %arg2, %c0_i32 : i32
    %1 = arith.extui %0 : i1 to i32
    %c0_i32_0 = arith.constant 0 : i32
    %2 = arith.cmpi ne, %1, %c0_i32_0 : i32
    scf.if %2 {
      %cst_10 = arith.constant 0.000000e+00 : f32
      %12 = vector.broadcast %cst_10 : f32 to vector<64x128xf32>
      %c0_11 = arith.constant 0 : index
      %c0_12 = arith.constant 0 : index
      %13 = vector.load %arg7[%c0_11, %c0_12] : memref<64x128xf32, #tpu.memory_space<vmem>>, vector<64x128xf32>
      tpu.vector_store %arg7[%c0_11, %c0_12], %12 {strides = array<i32>} : memref<64x128xf32, #tpu.memory_space<vmem>>, vector<64x128xf32>,
    } else {
    }
    %c0 = arith.constant 0 : index
    %c0_1 = arith.constant 0 : index
    %3 = vector.load %arg3[%c0, %c0_1] : memref<64x128xbf16, #tpu.memory_space<vmem>>, vector<64x128xbf16>
    %c0_2 = arith.constant 0 : index
    %c0_3 = arith.constant 0 : index
    %4 = vector.load %arg7[%c0_2, %c0_3] : memref<64x128xf32, #tpu.memory_space<vmem>>, vector<64x128xf32>
    %c0_4 = arith.constant 0 : index
    %c0_5 = arith.constant 0 : index
    %5 = vector.load %arg4[%c0_4, %c0_5] : memref<128x128xbf16, #tpu.memory_space<vmem>>, vector<128x128xbf16>
    %cst = arith.constant dense<0.000000e+00> : vector<64x128xf32>
    %6 = tpu.matmul %3, %5, %cst {dimension_numbers = #tpu.dot_dimension_numbers<[1], [0], [0], [1], [0, 0, 1, 1], [], []>} : vector<64x128xbf16>, vector<128x128xbf16>, vector<64x128xf32> -> vector<64x128xf32>
    %7 = arith.addf %4, %6 : vector<64x128xf32>
    %c0_6 = arith.constant 0 : index
    %c0_7 = arith.constant 0 : index
    %8 = vector.load %arg7[%c0_6, %c0_7] : memref<64x128xf32, #tpu.memory_space<vmem>>, vector<64x128xf32>
    tpu.vector_store %arg7[%c0_6, %c0_7], %7 {strides = array<i32>} : memref<64x128xf32, #tpu.memory_space<vmem>>, vector<64x128xf32>,
    %c0_i32_8 = arith.constant 0 : i32
    %9 = arith.cmpi eq, %arg2, %c0_i32_8 : i32
    %10 = arith.extui %9 : i1 to i32
    %c0_i32_9 = arith.constant 0 : i32
    %11 = arith.cmpi ne, %10, %c0_i32_9 : i32
    scf.if %11 {
      %c0_10 = arith.constant 0 : index
      %c0_11 = arith.constant 0 : index
      %12 = vector.load %arg7[%c0_10, %c0_11] : memref<64x128xf32, #tpu.memory_space<vmem>>, vector<64x128xf32>
      %c0_12 = arith.constant 0 : index
      %c0_13 = arith.constant 0 : index
      %13 = vector.load %arg5[%c0_12, %c0_13] : memref<1x128xf32, #tpu.memory_space<vmem>>, vector<1x128xf32>
      %14 = vector.broadcast %13 : vector<1x128xf32> to vector<64x128xf32>
      %15 = arith.addf %12, %14 : vector<64x128xf32>
      %c0_14 = arith.constant 0 : index
      %c0_15 = arith.constant 0 : index
      %16 = vector.load %arg6[%c0_14, %c0_15] : memref<64x128xf32, #tpu.memory_space<vmem>>, vector<64x128xf32>
      tpu.vector_store %arg6[%c0_14, %c0_15], %15 {strides = array<i32>} : memref<64x128xf32, #tpu.memory_space<vmem>>, vector<64x128xf32>,
    } else {
    }
    return
  }
  func.func @transform_0(%arg0: i32, %arg1: i32, %arg2: i32) -> (i32, i32) {
    %c0_i32 = arith.constant 0 : i32
    return %arg0, %arg2 : i32, i32
  }
  func.func @transform_1(%arg0: i32, %arg1: i32, %arg2: i32) -> (i32, i32) {
    %c0_i32 = arith.constant 0 : i32
    return %arg2, %arg1 : i32, i32
  }
  func.func @transform_2(%arg0: i32, %arg1: i32, %arg2: i32) -> (i32, i32) {
    %c0_i32 = arith.constant 0 : i32
    %c0_i32_0 = arith.constant 0 : i32
    return %c0_i32, %arg1 : i32, i32
  }
  func.func @transform_3(%arg0: i32, %arg1: i32, %arg2: i32) -> (i32, i32) {
    %c0_i32 = arith.constant 0 : i32
    return %arg0, %arg1 : i32, i32
  }
}

module attributes {stable_mosaic.version = 11 : i64} {
  func.func @_mm_kernel(%arg0: i32, %arg1: i32, %arg2: i32, %arg3: memref<64x128xbf16, #tpu.memory_space<vmem>>, %arg4: memref<128x128xbf16, #tpu.memory_space<vmem>>, %arg5: memref<1x128xf32, #tpu.memory_space<vmem>>, %arg6: memref<64x128xf32, #tpu.memory_space<vmem>>, %arg7: memref<64x128xf32, #tpu.memory_space<vmem>>) attributes {dimension_semantics = [#tpu.dimension_semantics<parallel>, #tpu.dimension_semantics<parallel>, #tpu.dimension_semantics<arbitrary>], iteration_bounds = array<i64: 1, 1, 1>, scalar_prefetch = 0 : i64, scratch_operands = 1 : i64, tpu.core_type = #tpu.core_type<tc>, window_params = [{transform_indices = @transform_0, window_bounds = array<i64: 64, 128>}, {transform_indices = @transform_1, window_bounds = array<i64: 128, 128>}, {transform_indices = @transform_2, window_bounds = array<i64: 1, 128>}, {transform_indices = @transform_3, window_bounds = array<i64: 64, 128>}]} {
    %c0_i32 = arith.constant 0 : i32
    %0 = arith.cmpi eq, %arg2, %c0_i32 : i32
    %1 = arith.extui %0 : i1 to i32
    %c0_i32_0 = arith.constant 0 : i32
    %2 = arith.cmpi ne, %1, %c0_i32_0 : i32
    scf.if %2 {
      %cst_13 = arith.constant 0.000000e+00 : f32
      %22 = vector.broadcast %cst_13 : f32 to vector<64x128xf32>
      %c0_14 = arith.constant 0 : index
      %c0_15 = arith.constant 0 : index
      %23 = vector.load %arg7[%c0_14, %c0_15] : memref<64x128xf32, #tpu.memory_space<vmem>>, vector<64x128xf32>
      tpu.vector_store %arg7[%c0_14, %c0_15], %22 {strides = array<i32>} : memref<64x128xf32, #tpu.memory_space<vmem>>, vector<64x128xf32>,
    } else {
    }
    %c0 = arith.constant 0 : index
    %c0_1 = arith.constant 0 : index
    %3 = vector.load %arg3[%c0, %c0_1] : memref<64x128xbf16, #tpu.memory_space<vmem>>, vector<64x128xbf16>
    %4 = arith.extf %3 : vector<64x128xbf16> to vector<64x128xf32>
    %cst = arith.constant 0.000000e+00 : f32
    %5 = vector.broadcast %cst : f32 to vector<64x128xf32>
    %6 = arith.cmpf ogt, %4, %5 : vector<64x128xf32>
    %cst_2 = arith.constant 0.000000e+00 : f32
    %7 = vector.broadcast %cst_2 : f32 to vector<64x128xf32>
    %8 = arith.minimumf %4, %7 : vector<64x128xf32>
    %9 = math.exp %8 : vector<64x128xf32>
    %cst_3 = arith.constant 1.000000e+00 : f32
    %10 = vector.broadcast %cst_3 : f32 to vector<64x128xf32>
    %11 = arith.subf %9, %10 : vector<64x128xf32>
    %12 = arith.select %6, %4, %11 : vector<64x128xi1>, vector<64x128xf32>
    %13 = arith.truncf %12 : vector<64x128xf32> to vector<64x128xbf16>
    %c0_4 = arith.constant 0 : index
    %c0_5 = arith.constant 0 : index
    %14 = vector.load %arg7[%c0_4, %c0_5] : memref<64x128xf32, #tpu.memory_space<vmem>>, vector<64x128xf32>
    %c0_6 = arith.constant 0 : index
    %c0_7 = arith.constant 0 : index
    %15 = vector.load %arg4[%c0_6, %c0_7] : memref<128x128xbf16, #tpu.memory_space<vmem>>, vector<128x128xbf16>
    %cst_8 = arith.constant dense<0.000000e+00> : vector<64x128xf32>
    %16 = tpu.matmul %13, %15, %cst_8 {dimension_numbers = #tpu.dot_dimension_numbers<[1], [0], [0], [1], [0, 0, 1, 1], [], []>} : vector<64x128xbf16>, vector<128x128xbf16>, vector<64x128xf32> -> vector<64x128xf32>
    %17 = arith.addf %14, %16 : vector<64x128xf32>
    %c0_9 = arith.constant 0 : index
    %c0_10 = arith.constant 0 : index
    %18 = vector.load %arg7[%c0_9, %c0_10] : memref<64x128xf32, #tpu.memory_space<vmem>>, vector<64x128xf32>
    tpu.vector_store %arg7[%c0_9, %c0_10], %17 {strides = array<i32>} : memref<64x128xf32, #tpu.memory_space<vmem>>, vector<64x128xf32>,
    %c0_i32_11 = arith.constant 0 : i32
    %19 = arith.cmpi eq, %arg2, %c0_i32_11 : i32
    %20 = arith.extui %19 : i1 to i32
    %c0_i32_12 = arith.constant 0 : i32
    %21 = arith.cmpi ne, %20, %c0_i32_12 : i32
    scf.if %21 {
      %c0_13 = arith.constant 0 : index
      %c0_14 = arith.constant 0 : index
      %22 = vector.load %arg7[%c0_13, %c0_14] : memref<64x128xf32, #tpu.memory_space<vmem>>, vector<64x128xf32>
      %c0_15 = arith.constant 0 : index
      %c0_16 = arith.constant 0 : index
      %23 = vector.load %arg5[%c0_15, %c0_16] : memref<1x128xf32, #tpu.memory_space<vmem>>, vector<1x128xf32>
      %24 = vector.broadcast %23 : vector<1x128xf32> to vector<64x128xf32>
      %25 = arith.addf %22, %24 : vector<64x128xf32>
      %c0_17 = arith.constant 0 : index
      %c0_18 = arith.constant 0 : index
      %26 = vector.load %arg6[%c0_17, %c0_18] : memref<64x128xf32, #tpu.memory_space<vmem>>, vector<64x128xf32>
      tpu.vector_store %arg6[%c0_17, %c0_18], %25 {strides = array<i32>} : memref<64x128xf32, #tpu.memory_space<vmem>>, vector<64x128xf32>,
    } else {
    }
    return
  }
  func.func @transform_0(%arg0: i32, %arg1: i32, %arg2: i32) -> (i32, i32) {
    %c0_i32 = arith.constant 0 : i32
    return %arg0, %arg2 : i32, i32
  }
  func.func @transform_1(%arg0: i32, %arg1: i32, %arg2: i32) -> (i32, i32) {
    %c0_i32 = arith.constant 0 : i32
    return %arg2, %arg1 : i32, i32
  }
  func.func @transform_2(%arg0: i32, %arg1: i32, %arg2: i32) -> (i32, i32) {
    %c0_i32 = arith.constant 0 : i32
    %c0_i32_0 = arith.constant 0 : i32
    return %c0_i32, %arg1 : i32, i32
  }
  func.func @transform_3(%arg0: i32, %arg1: i32, %arg2: i32) -> (i32, i32) {
    %c0_i32 = arith.constant 0 : i32
    return %arg0, %arg1 : i32, i32
  }
}

module attributes {stable_mosaic.version = 11 : i64} {
  func.func @_res_tail_kernel(%arg0: i32, %arg1: memref<64x128xbf16, #tpu.memory_space<vmem>>, %arg2: memref<64x128xbf16, #tpu.memory_space<vmem>>, %arg3: memref<128x128xbf16, #tpu.memory_space<vmem>>, %arg4: memref<128x128xbf16, #tpu.memory_space<vmem>>, %arg5: memref<1x128xf32, #tpu.memory_space<vmem>>, %arg6: memref<64x128xf32, #tpu.memory_space<vmem>>) attributes {dimension_semantics = [#tpu.dimension_semantics<parallel>], iteration_bounds = array<i64: 1>, scalar_prefetch = 0 : i64, scratch_operands = 0 : i64, tpu.core_type = #tpu.core_type<tc>, window_params = [{transform_indices = @transform_0, window_bounds = array<i64: 64, 128>}, {transform_indices = @transform_1, window_bounds = array<i64: 64, 128>}, {pipeline_mode = #tpu.pipeline_mode<synchronous>, transform_indices = @transform_2, window_bounds = array<i64: 128, 128>}, {pipeline_mode = #tpu.pipeline_mode<synchronous>, transform_indices = @transform_3, window_bounds = array<i64: 128, 128>}, {pipeline_mode = #tpu.pipeline_mode<synchronous>, transform_indices = @transform_4, window_bounds = array<i64: 1, 128>}, {transform_indices = @transform_5, window_bounds = array<i64: 64, 128>}]} {
    %c0 = arith.constant 0 : index
    %c0_0 = arith.constant 0 : index
    %0 = vector.load %arg1[%c0, %c0_0] : memref<64x128xbf16, #tpu.memory_space<vmem>>, vector<64x128xbf16>
    %1 = arith.extf %0 : vector<64x128xbf16> to vector<64x128xf32>
    %cst = arith.constant 0.000000e+00 : f32
    %2 = vector.broadcast %cst : f32 to vector<64x128xf32>
    %3 = arith.cmpf ogt, %1, %2 : vector<64x128xf32>
    %cst_1 = arith.constant 0.000000e+00 : f32
    %4 = vector.broadcast %cst_1 : f32 to vector<64x128xf32>
    %5 = arith.minimumf %1, %4 : vector<64x128xf32>
    %6 = math.exp %5 : vector<64x128xf32>
    %cst_2 = arith.constant 1.000000e+00 : f32
    %7 = vector.broadcast %cst_2 : f32 to vector<64x128xf32>
    %8 = arith.subf %6, %7 : vector<64x128xf32>
    %9 = arith.select %3, %1, %8 : vector<64x128xi1>, vector<64x128xf32>
    %10 = arith.truncf %9 : vector<64x128xf32> to vector<64x128xbf16>
    %c0_3 = arith.constant 0 : index
    %c0_4 = arith.constant 0 : index
    %11 = vector.load %arg3[%c0_3, %c0_4] : memref<128x128xbf16, #tpu.memory_space<vmem>>, vector<128x128xbf16>
    %cst_5 = arith.constant dense<0.000000e+00> : vector<64x128xf32>
    %12 = tpu.matmul %10, %11, %cst_5 {dimension_numbers = #tpu.dot_dimension_numbers<[1], [0], [0], [1], [0, 0, 1, 1], [], []>} : vector<64x128xbf16>, vector<128x128xbf16>, vector<64x128xf32> -> vector<64x128xf32>
    %c0_6 = arith.constant 0 : index
    %c0_7 = arith.constant 0 : index
    %13 = vector.load %arg2[%c0_6, %c0_7] : memref<64x128xbf16, #tpu.memory_space<vmem>>, vector<64x128xbf16>
    %c0_8 = arith.constant 0 : index
    %c0_9 = arith.constant 0 : index
    %14 = vector.load %arg4[%c0_8, %c0_9] : memref<128x128xbf16, #tpu.memory_space<vmem>>, vector<128x128xbf16>
    %cst_10 = arith.constant dense<0.000000e+00> : vector<64x128xf32>
    %15 = tpu.matmul %13, %14, %cst_10 {dimension_numbers = #tpu.dot_dimension_numbers<[1], [0], [0], [1], [0, 0, 1, 1], [], []>} : vector<64x128xbf16>, vector<128x128xbf16>, vector<64x128xf32> -> vector<64x128xf32>
    %16 = arith.addf %12, %15 : vector<64x128xf32>
    %c0_11 = arith.constant 0 : index
    %c0_12 = arith.constant 0 : index
    %17 = vector.load %arg5[%c0_11, %c0_12] : memref<1x128xf32, #tpu.memory_space<vmem>>, vector<1x128xf32>
    %18 = vector.broadcast %17 : vector<1x128xf32> to vector<64x128xf32>
    %19 = arith.addf %16, %18 : vector<64x128xf32>
    %c0_13 = arith.constant 0 : index
    %c0_14 = arith.constant 0 : index
    %20 = vector.load %arg6[%c0_13, %c0_14] : memref<64x128xf32, #tpu.memory_space<vmem>>, vector<64x128xf32>
    tpu.vector_store %arg6[%c0_13, %c0_14], %19 {strides = array<i32>} : memref<64x128xf32, #tpu.memory_space<vmem>>, vector<64x128xf32>,
    return
  }
  func.func @transform_0(%arg0: i32) -> (i32, i32) {
    %c0_i32 = arith.constant 0 : i32
    %c0_i32_0 = arith.constant 0 : i32
    return %arg0, %c0_i32 : i32, i32
  }
  func.func @transform_1(%arg0: i32) -> (i32, i32) {
    %c0_i32 = arith.constant 0 : i32
    %c0_i32_0 = arith.constant 0 : i32
    return %arg0, %c0_i32 : i32, i32
  }
  func.func @transform_2(%arg0: i32) -> (i32, i32) {
    %c0_i32 = arith.constant 0 : i32
    %c0_i32_0 = arith.constant 0 : i32
    %c0_i32_1 = arith.constant 0 : i32
    return %c0_i32, %c0_i32_0 : i32, i32
  }
  func.func @transform_3(%arg0: i32) -> (i32, i32) {
    %c0_i32 = arith.constant 0 : i32
    %c0_i32_0 = arith.constant 0 : i32
    %c0_i32_1 = arith.constant 0 : i32
    return %c0_i32, %c0_i32_0 : i32, i32
  }
  func.func @transform_4(%arg0: i32) -> (i32, i32) {
    %c0_i32 = arith.constant 0 : i32
    %c0_i32_0 = arith.constant 0 : i32
    %c0_i32_1 = arith.constant 0 : i32
    return %c0_i32, %c0_i32_0 : i32, i32
  }
  func.func @transform_5(%arg0: i32) -> (i32, i32) {
    %c0_i32 = arith.constant 0 : i32
    %c0_i32_0 = arith.constant 0 : i32
    return %arg0, %c0_i32 : i32, i32
  }
}

module attributes {stable_mosaic.version = 11 : i64} {
  func.func @_mm_kernel(%arg0: i32, %arg1: i32, %arg2: i32, %arg3: memref<16x128xbf16, #tpu.memory_space<vmem>>, %arg4: memref<128x128xbf16, #tpu.memory_space<vmem>>, %arg5: memref<1x128xf32, #tpu.memory_space<vmem>>, %arg6: memref<16x128xf32, #tpu.memory_space<vmem>>, %arg7: memref<16x128xf32, #tpu.memory_space<vmem>>) attributes {dimension_semantics = [#tpu.dimension_semantics<parallel>, #tpu.dimension_semantics<parallel>, #tpu.dimension_semantics<arbitrary>], iteration_bounds = array<i64: 1, 1, 1>, scalar_prefetch = 0 : i64, scratch_operands = 1 : i64, tpu.core_type = #tpu.core_type<tc>, window_params = [{transform_indices = @transform_0, window_bounds = array<i64: 16, 128>}, {transform_indices = @transform_1, window_bounds = array<i64: 128, 128>}, {transform_indices = @transform_2, window_bounds = array<i64: 1, 128>}, {transform_indices = @transform_3, window_bounds = array<i64: 16, 128>}]} {
    %c0_i32 = arith.constant 0 : i32
    %0 = arith.cmpi eq, %arg2, %c0_i32 : i32
    %1 = arith.extui %0 : i1 to i32
    %c0_i32_0 = arith.constant 0 : i32
    %2 = arith.cmpi ne, %1, %c0_i32_0 : i32
    scf.if %2 {
      %cst_13 = arith.constant 0.000000e+00 : f32
      %22 = vector.broadcast %cst_13 : f32 to vector<16x128xf32>
      %c0_14 = arith.constant 0 : index
      %c0_15 = arith.constant 0 : index
      %23 = vector.load %arg7[%c0_14, %c0_15] : memref<16x128xf32, #tpu.memory_space<vmem>>, vector<16x128xf32>
      tpu.vector_store %arg7[%c0_14, %c0_15], %22 {strides = array<i32>} : memref<16x128xf32, #tpu.memory_space<vmem>>, vector<16x128xf32>,
    } else {
    }
    %c0 = arith.constant 0 : index
    %c0_1 = arith.constant 0 : index
    %3 = vector.load %arg3[%c0, %c0_1] : memref<16x128xbf16, #tpu.memory_space<vmem>>, vector<16x128xbf16>
    %4 = arith.extf %3 : vector<16x128xbf16> to vector<16x128xf32>
    %cst = arith.constant 0.000000e+00 : f32
    %5 = vector.broadcast %cst : f32 to vector<16x128xf32>
    %6 = arith.cmpf ogt, %4, %5 : vector<16x128xf32>
    %cst_2 = arith.constant 0.000000e+00 : f32
    %7 = vector.broadcast %cst_2 : f32 to vector<16x128xf32>
    %8 = arith.minimumf %4, %7 : vector<16x128xf32>
    %9 = math.exp %8 : vector<16x128xf32>
    %cst_3 = arith.constant 1.000000e+00 : f32
    %10 = vector.broadcast %cst_3 : f32 to vector<16x128xf32>
    %11 = arith.subf %9, %10 : vector<16x128xf32>
    %12 = arith.select %6, %4, %11 : vector<16x128xi1>, vector<16x128xf32>
    %13 = arith.truncf %12 : vector<16x128xf32> to vector<16x128xbf16>
    %c0_4 = arith.constant 0 : index
    %c0_5 = arith.constant 0 : index
    %14 = vector.load %arg7[%c0_4, %c0_5] : memref<16x128xf32, #tpu.memory_space<vmem>>, vector<16x128xf32>
    %c0_6 = arith.constant 0 : index
    %c0_7 = arith.constant 0 : index
    %15 = vector.load %arg4[%c0_6, %c0_7] : memref<128x128xbf16, #tpu.memory_space<vmem>>, vector<128x128xbf16>
    %cst_8 = arith.constant dense<0.000000e+00> : vector<16x128xf32>
    %16 = tpu.matmul %13, %15, %cst_8 {dimension_numbers = #tpu.dot_dimension_numbers<[1], [0], [0], [1], [0, 0, 1, 1], [], []>} : vector<16x128xbf16>, vector<128x128xbf16>, vector<16x128xf32> -> vector<16x128xf32>
    %17 = arith.addf %14, %16 : vector<16x128xf32>
    %c0_9 = arith.constant 0 : index
    %c0_10 = arith.constant 0 : index
    %18 = vector.load %arg7[%c0_9, %c0_10] : memref<16x128xf32, #tpu.memory_space<vmem>>, vector<16x128xf32>
    tpu.vector_store %arg7[%c0_9, %c0_10], %17 {strides = array<i32>} : memref<16x128xf32, #tpu.memory_space<vmem>>, vector<16x128xf32>,
    %c0_i32_11 = arith.constant 0 : i32
    %19 = arith.cmpi eq, %arg2, %c0_i32_11 : i32
    %20 = arith.extui %19 : i1 to i32
    %c0_i32_12 = arith.constant 0 : i32
    %21 = arith.cmpi ne, %20, %c0_i32_12 : i32
    scf.if %21 {
      %c0_13 = arith.constant 0 : index
      %c0_14 = arith.constant 0 : index
      %22 = vector.load %arg7[%c0_13, %c0_14] : memref<16x128xf32, #tpu.memory_space<vmem>>, vector<16x128xf32>
      %c0_15 = arith.constant 0 : index
      %c0_16 = arith.constant 0 : index
      %23 = vector.load %arg5[%c0_15, %c0_16] : memref<1x128xf32, #tpu.memory_space<vmem>>, vector<1x128xf32>
      %24 = vector.broadcast %23 : vector<1x128xf32> to vector<16x128xf32>
      %25 = arith.addf %22, %24 : vector<16x128xf32>
      %c0_17 = arith.constant 0 : index
      %c0_18 = arith.constant 0 : index
      %26 = vector.load %arg6[%c0_17, %c0_18] : memref<16x128xf32, #tpu.memory_space<vmem>>, vector<16x128xf32>
      tpu.vector_store %arg6[%c0_17, %c0_18], %25 {strides = array<i32>} : memref<16x128xf32, #tpu.memory_space<vmem>>, vector<16x128xf32>,
    } else {
    }
    return
  }
  func.func @transform_0(%arg0: i32, %arg1: i32, %arg2: i32) -> (i32, i32) {
    %c0_i32 = arith.constant 0 : i32
    return %arg0, %arg2 : i32, i32
  }
  func.func @transform_1(%arg0: i32, %arg1: i32, %arg2: i32) -> (i32, i32) {
    %c0_i32 = arith.constant 0 : i32
    return %arg2, %arg1 : i32, i32
  }
  func.func @transform_2(%arg0: i32, %arg1: i32, %arg2: i32) -> (i32, i32) {
    %c0_i32 = arith.constant 0 : i32
    %c0_i32_0 = arith.constant 0 : i32
    return %c0_i32, %arg1 : i32, i32
  }
  func.func @transform_3(%arg0: i32, %arg1: i32, %arg2: i32) -> (i32, i32) {
    %c0_i32 = arith.constant 0 : i32
    return %arg0, %arg1 : i32, i32
  }
}

module attributes {stable_mosaic.version = 11 : i64} {
  func.func @_mm_kernel(%arg0: i32, %arg1: i32, %arg2: i32, %arg3: memref<16x256xbf16, #tpu.memory_space<vmem>>, %arg4: memref<256x128xbf16, #tpu.memory_space<vmem>>, %arg5: memref<1x128xf32, #tpu.memory_space<vmem>>, %arg6: memref<16x128xf32, #tpu.memory_space<vmem>>, %arg7: memref<16x128xf32, #tpu.memory_space<vmem>>) attributes {dimension_semantics = [#tpu.dimension_semantics<parallel>, #tpu.dimension_semantics<parallel>, #tpu.dimension_semantics<arbitrary>], iteration_bounds = array<i64: 1, 1, 1>, scalar_prefetch = 0 : i64, scratch_operands = 1 : i64, tpu.core_type = #tpu.core_type<tc>, window_params = [{transform_indices = @transform_0, window_bounds = array<i64: 16, 256>}, {transform_indices = @transform_1, window_bounds = array<i64: 256, 128>}, {transform_indices = @transform_2, window_bounds = array<i64: 1, 128>}, {transform_indices = @transform_3, window_bounds = array<i64: 16, 128>}]} {
    %c0_i32 = arith.constant 0 : i32
    %0 = arith.cmpi eq, %arg2, %c0_i32 : i32
    %1 = arith.extui %0 : i1 to i32
    %c0_i32_0 = arith.constant 0 : i32
    %2 = arith.cmpi ne, %1, %c0_i32_0 : i32
    scf.if %2 {
      %cst_13 = arith.constant 0.000000e+00 : f32
      %22 = vector.broadcast %cst_13 : f32 to vector<16x128xf32>
      %c0_14 = arith.constant 0 : index
      %c0_15 = arith.constant 0 : index
      %23 = vector.load %arg7[%c0_14, %c0_15] : memref<16x128xf32, #tpu.memory_space<vmem>>, vector<16x128xf32>
      tpu.vector_store %arg7[%c0_14, %c0_15], %22 {strides = array<i32>} : memref<16x128xf32, #tpu.memory_space<vmem>>, vector<16x128xf32>,
    } else {
    }
    %c0 = arith.constant 0 : index
    %c0_1 = arith.constant 0 : index
    %3 = vector.load %arg3[%c0, %c0_1] : memref<16x256xbf16, #tpu.memory_space<vmem>>, vector<16x256xbf16>
    %4 = arith.extf %3 : vector<16x256xbf16> to vector<16x256xf32>
    %cst = arith.constant 0.000000e+00 : f32
    %5 = vector.broadcast %cst : f32 to vector<16x256xf32>
    %6 = arith.cmpf ogt, %4, %5 : vector<16x256xf32>
    %cst_2 = arith.constant 0.000000e+00 : f32
    %7 = vector.broadcast %cst_2 : f32 to vector<16x256xf32>
    %8 = arith.minimumf %4, %7 : vector<16x256xf32>
    %9 = math.exp %8 : vector<16x256xf32>
    %cst_3 = arith.constant 1.000000e+00 : f32
    %10 = vector.broadcast %cst_3 : f32 to vector<16x256xf32>
    %11 = arith.subf %9, %10 : vector<16x256xf32>
    %12 = arith.select %6, %4, %11 : vector<16x256xi1>, vector<16x256xf32>
    %13 = arith.truncf %12 : vector<16x256xf32> to vector<16x256xbf16>
    %c0_4 = arith.constant 0 : index
    %c0_5 = arith.constant 0 : index
    %14 = vector.load %arg7[%c0_4, %c0_5] : memref<16x128xf32, #tpu.memory_space<vmem>>, vector<16x128xf32>
    %c0_6 = arith.constant 0 : index
    %c0_7 = arith.constant 0 : index
    %15 = vector.load %arg4[%c0_6, %c0_7] : memref<256x128xbf16, #tpu.memory_space<vmem>>, vector<256x128xbf16>
    %cst_8 = arith.constant dense<0.000000e+00> : vector<16x128xf32>
    %16 = tpu.matmul %13, %15, %cst_8 {dimension_numbers = #tpu.dot_dimension_numbers<[1], [0], [0], [1], [0, 0, 1, 1], [], []>} : vector<16x256xbf16>, vector<256x128xbf16>, vector<16x128xf32> -> vector<16x128xf32>
    %17 = arith.addf %14, %16 : vector<16x128xf32>
    %c0_9 = arith.constant 0 : index
    %c0_10 = arith.constant 0 : index
    %18 = vector.load %arg7[%c0_9, %c0_10] : memref<16x128xf32, #tpu.memory_space<vmem>>, vector<16x128xf32>
    tpu.vector_store %arg7[%c0_9, %c0_10], %17 {strides = array<i32>} : memref<16x128xf32, #tpu.memory_space<vmem>>, vector<16x128xf32>,
    %c0_i32_11 = arith.constant 0 : i32
    %19 = arith.cmpi eq, %arg2, %c0_i32_11 : i32
    %20 = arith.extui %19 : i1 to i32
    %c0_i32_12 = arith.constant 0 : i32
    %21 = arith.cmpi ne, %20, %c0_i32_12 : i32
    scf.if %21 {
      %c0_13 = arith.constant 0 : index
      %c0_14 = arith.constant 0 : index
      %22 = vector.load %arg7[%c0_13, %c0_14] : memref<16x128xf32, #tpu.memory_space<vmem>>, vector<16x128xf32>
      %c0_15 = arith.constant 0 : index
      %c0_16 = arith.constant 0 : index
      %23 = vector.load %arg5[%c0_15, %c0_16] : memref<1x128xf32, #tpu.memory_space<vmem>>, vector<1x128xf32>
      %24 = vector.broadcast %23 : vector<1x128xf32> to vector<16x128xf32>
      %25 = arith.addf %22, %24 : vector<16x128xf32>
      %c0_17 = arith.constant 0 : index
      %c0_18 = arith.constant 0 : index
      %26 = vector.load %arg6[%c0_17, %c0_18] : memref<16x128xf32, #tpu.memory_space<vmem>>, vector<16x128xf32>
      tpu.vector_store %arg6[%c0_17, %c0_18], %25 {strides = array<i32>} : memref<16x128xf32, #tpu.memory_space<vmem>>, vector<16x128xf32>,
    } else {
    }
    return
  }
  func.func @transform_0(%arg0: i32, %arg1: i32, %arg2: i32) -> (i32, i32) {
    %c0_i32 = arith.constant 0 : i32
    return %arg0, %arg2 : i32, i32
  }
  func.func @transform_1(%arg0: i32, %arg1: i32, %arg2: i32) -> (i32, i32) {
    %c0_i32 = arith.constant 0 : i32
    return %arg2, %arg1 : i32, i32
  }
  func.func @transform_2(%arg0: i32, %arg1: i32, %arg2: i32) -> (i32, i32) {
    %c0_i32 = arith.constant 0 : i32
    %c0_i32_0 = arith.constant 0 : i32
    return %c0_i32, %arg1 : i32, i32
  }
  func.func @transform_3(%arg0: i32, %arg1: i32, %arg2: i32) -> (i32, i32) {
    %c0_i32 = arith.constant 0 : i32
    return %arg0, %arg1 : i32, i32
  }
}

module attributes {stable_mosaic.version = 11 : i64} {
  func.func @_res_tail_kernel(%arg0: i32, %arg1: memref<16x128xbf16, #tpu.memory_space<vmem>>, %arg2: memref<16x128xbf16, #tpu.memory_space<vmem>>, %arg3: memref<128x128xbf16, #tpu.memory_space<vmem>>, %arg4: memref<128x128xbf16, #tpu.memory_space<vmem>>, %arg5: memref<1x128xf32, #tpu.memory_space<vmem>>, %arg6: memref<16x128xf32, #tpu.memory_space<vmem>>) attributes {dimension_semantics = [#tpu.dimension_semantics<parallel>], iteration_bounds = array<i64: 1>, scalar_prefetch = 0 : i64, scratch_operands = 0 : i64, tpu.core_type = #tpu.core_type<tc>, window_params = [{transform_indices = @transform_0, window_bounds = array<i64: 16, 128>}, {transform_indices = @transform_1, window_bounds = array<i64: 16, 128>}, {pipeline_mode = #tpu.pipeline_mode<synchronous>, transform_indices = @transform_2, window_bounds = array<i64: 128, 128>}, {pipeline_mode = #tpu.pipeline_mode<synchronous>, transform_indices = @transform_3, window_bounds = array<i64: 128, 128>}, {pipeline_mode = #tpu.pipeline_mode<synchronous>, transform_indices = @transform_4, window_bounds = array<i64: 1, 128>}, {transform_indices = @transform_5, window_bounds = array<i64: 16, 128>}]} {
    %c0 = arith.constant 0 : index
    %c0_0 = arith.constant 0 : index
    %0 = vector.load %arg1[%c0, %c0_0] : memref<16x128xbf16, #tpu.memory_space<vmem>>, vector<16x128xbf16>
    %1 = arith.extf %0 : vector<16x128xbf16> to vector<16x128xf32>
    %cst = arith.constant 0.000000e+00 : f32
    %2 = vector.broadcast %cst : f32 to vector<16x128xf32>
    %3 = arith.cmpf ogt, %1, %2 : vector<16x128xf32>
    %cst_1 = arith.constant 0.000000e+00 : f32
    %4 = vector.broadcast %cst_1 : f32 to vector<16x128xf32>
    %5 = arith.minimumf %1, %4 : vector<16x128xf32>
    %6 = math.exp %5 : vector<16x128xf32>
    %cst_2 = arith.constant 1.000000e+00 : f32
    %7 = vector.broadcast %cst_2 : f32 to vector<16x128xf32>
    %8 = arith.subf %6, %7 : vector<16x128xf32>
    %9 = arith.select %3, %1, %8 : vector<16x128xi1>, vector<16x128xf32>
    %10 = arith.truncf %9 : vector<16x128xf32> to vector<16x128xbf16>
    %c0_3 = arith.constant 0 : index
    %c0_4 = arith.constant 0 : index
    %11 = vector.load %arg3[%c0_3, %c0_4] : memref<128x128xbf16, #tpu.memory_space<vmem>>, vector<128x128xbf16>
    %cst_5 = arith.constant dense<0.000000e+00> : vector<16x128xf32>
    %12 = tpu.matmul %10, %11, %cst_5 {dimension_numbers = #tpu.dot_dimension_numbers<[1], [0], [0], [1], [0, 0, 1, 1], [], []>} : vector<16x128xbf16>, vector<128x128xbf16>, vector<16x128xf32> -> vector<16x128xf32>
    %c0_6 = arith.constant 0 : index
    %c0_7 = arith.constant 0 : index
    %13 = vector.load %arg2[%c0_6, %c0_7] : memref<16x128xbf16, #tpu.memory_space<vmem>>, vector<16x128xbf16>
    %c0_8 = arith.constant 0 : index
    %c0_9 = arith.constant 0 : index
    %14 = vector.load %arg4[%c0_8, %c0_9] : memref<128x128xbf16, #tpu.memory_space<vmem>>, vector<128x128xbf16>
    %cst_10 = arith.constant dense<0.000000e+00> : vector<16x128xf32>
    %15 = tpu.matmul %13, %14, %cst_10 {dimension_numbers = #tpu.dot_dimension_numbers<[1], [0], [0], [1], [0, 0, 1, 1], [], []>} : vector<16x128xbf16>, vector<128x128xbf16>, vector<16x128xf32> -> vector<16x128xf32>
    %16 = arith.addf %12, %15 : vector<16x128xf32>
    %c0_11 = arith.constant 0 : index
    %c0_12 = arith.constant 0 : index
    %17 = vector.load %arg5[%c0_11, %c0_12] : memref<1x128xf32, #tpu.memory_space<vmem>>, vector<1x128xf32>
    %18 = vector.broadcast %17 : vector<1x128xf32> to vector<16x128xf32>
    %19 = arith.addf %16, %18 : vector<16x128xf32>
    %c0_13 = arith.constant 0 : index
    %c0_14 = arith.constant 0 : index
    %20 = vector.load %arg6[%c0_13, %c0_14] : memref<16x128xf32, #tpu.memory_space<vmem>>, vector<16x128xf32>
    tpu.vector_store %arg6[%c0_13, %c0_14], %19 {strides = array<i32>} : memref<16x128xf32, #tpu.memory_space<vmem>>, vector<16x128xf32>,
    return
  }
  func.func @transform_0(%arg0: i32) -> (i32, i32) {
    %c0_i32 = arith.constant 0 : i32
    %c0_i32_0 = arith.constant 0 : i32
    return %arg0, %c0_i32 : i32, i32
  }
  func.func @transform_1(%arg0: i32) -> (i32, i32) {
    %c0_i32 = arith.constant 0 : i32
    %c0_i32_0 = arith.constant 0 : i32
    return %arg0, %c0_i32 : i32, i32
  }
  func.func @transform_2(%arg0: i32) -> (i32, i32) {
    %c0_i32 = arith.constant 0 : i32
    %c0_i32_0 = arith.constant 0 : i32
    %c0_i32_1 = arith.constant 0 : i32
    return %c0_i32, %c0_i32_0 : i32, i32
  }
  func.func @transform_3(%arg0: i32) -> (i32, i32) {
    %c0_i32 = arith.constant 0 : i32
    %c0_i32_0 = arith.constant 0 : i32
    %c0_i32_1 = arith.constant 0 : i32
    return %c0_i32, %c0_i32_0 : i32, i32
  }
  func.func @transform_4(%arg0: i32) -> (i32, i32) {
    %c0_i32 = arith.constant 0 : i32
    %c0_i32_0 = arith.constant 0 : i32
    %c0_i32_1 = arith.constant 0 : i32
    return %c0_i32, %c0_i32_0 : i32, i32
  }
  func.func @transform_5(%arg0: i32) -> (i32, i32) {
    %c0_i32 = arith.constant 0 : i32
    %c0_i32_0 = arith.constant 0 : i32
    return %arg0, %c0_i32 : i32, i32
  }
}

module attributes {stable_mosaic.version = 11 : i64} {
  func.func @_mm_kernel(%arg0: i32, %arg1: i32, %arg2: i32, %arg3: memref<8x128xbf16, #tpu.memory_space<vmem>>, %arg4: memref<128x128xbf16, #tpu.memory_space<vmem>>, %arg5: memref<1x128xf32, #tpu.memory_space<vmem>>, %arg6: memref<8x128xf32, #tpu.memory_space<vmem>>, %arg7: memref<8x128xf32, #tpu.memory_space<vmem>>) attributes {dimension_semantics = [#tpu.dimension_semantics<parallel>, #tpu.dimension_semantics<parallel>, #tpu.dimension_semantics<arbitrary>], iteration_bounds = array<i64: 1, 1, 1>, scalar_prefetch = 0 : i64, scratch_operands = 1 : i64, tpu.core_type = #tpu.core_type<tc>, window_params = [{transform_indices = @transform_0, window_bounds = array<i64: 8, 128>}, {transform_indices = @transform_1, window_bounds = array<i64: 128, 128>}, {transform_indices = @transform_2, window_bounds = array<i64: 1, 128>}, {transform_indices = @transform_3, window_bounds = array<i64: 8, 128>}]} {
    %c0_i32 = arith.constant 0 : i32
    %0 = arith.cmpi eq, %arg2, %c0_i32 : i32
    %1 = arith.extui %0 : i1 to i32
    %c0_i32_0 = arith.constant 0 : i32
    %2 = arith.cmpi ne, %1, %c0_i32_0 : i32
    scf.if %2 {
      %cst_13 = arith.constant 0.000000e+00 : f32
      %22 = vector.broadcast %cst_13 : f32 to vector<8x128xf32>
      %c0_14 = arith.constant 0 : index
      %c0_15 = arith.constant 0 : index
      %23 = vector.load %arg7[%c0_14, %c0_15] : memref<8x128xf32, #tpu.memory_space<vmem>>, vector<8x128xf32>
      tpu.vector_store %arg7[%c0_14, %c0_15], %22 {strides = array<i32>} : memref<8x128xf32, #tpu.memory_space<vmem>>, vector<8x128xf32>,
    } else {
    }
    %c0 = arith.constant 0 : index
    %c0_1 = arith.constant 0 : index
    %3 = vector.load %arg3[%c0, %c0_1] : memref<8x128xbf16, #tpu.memory_space<vmem>>, vector<8x128xbf16>
    %4 = arith.extf %3 : vector<8x128xbf16> to vector<8x128xf32>
    %cst = arith.constant 0.000000e+00 : f32
    %5 = vector.broadcast %cst : f32 to vector<8x128xf32>
    %6 = arith.cmpf ogt, %4, %5 : vector<8x128xf32>
    %cst_2 = arith.constant 0.000000e+00 : f32
    %7 = vector.broadcast %cst_2 : f32 to vector<8x128xf32>
    %8 = arith.minimumf %4, %7 : vector<8x128xf32>
    %9 = math.exp %8 : vector<8x128xf32>
    %cst_3 = arith.constant 1.000000e+00 : f32
    %10 = vector.broadcast %cst_3 : f32 to vector<8x128xf32>
    %11 = arith.subf %9, %10 : vector<8x128xf32>
    %12 = arith.select %6, %4, %11 : vector<8x128xi1>, vector<8x128xf32>
    %13 = arith.truncf %12 : vector<8x128xf32> to vector<8x128xbf16>
    %c0_4 = arith.constant 0 : index
    %c0_5 = arith.constant 0 : index
    %14 = vector.load %arg7[%c0_4, %c0_5] : memref<8x128xf32, #tpu.memory_space<vmem>>, vector<8x128xf32>
    %c0_6 = arith.constant 0 : index
    %c0_7 = arith.constant 0 : index
    %15 = vector.load %arg4[%c0_6, %c0_7] : memref<128x128xbf16, #tpu.memory_space<vmem>>, vector<128x128xbf16>
    %cst_8 = arith.constant dense<0.000000e+00> : vector<8x128xf32>
    %16 = tpu.matmul %13, %15, %cst_8 {dimension_numbers = #tpu.dot_dimension_numbers<[1], [0], [0], [1], [0, 0, 1, 1], [], []>} : vector<8x128xbf16>, vector<128x128xbf16>, vector<8x128xf32> -> vector<8x128xf32>
    %17 = arith.addf %14, %16 : vector<8x128xf32>
    %c0_9 = arith.constant 0 : index
    %c0_10 = arith.constant 0 : index
    %18 = vector.load %arg7[%c0_9, %c0_10] : memref<8x128xf32, #tpu.memory_space<vmem>>, vector<8x128xf32>
    tpu.vector_store %arg7[%c0_9, %c0_10], %17 {strides = array<i32>} : memref<8x128xf32, #tpu.memory_space<vmem>>, vector<8x128xf32>,
    %c0_i32_11 = arith.constant 0 : i32
    %19 = arith.cmpi eq, %arg2, %c0_i32_11 : i32
    %20 = arith.extui %19 : i1 to i32
    %c0_i32_12 = arith.constant 0 : i32
    %21 = arith.cmpi ne, %20, %c0_i32_12 : i32
    scf.if %21 {
      %c0_13 = arith.constant 0 : index
      %c0_14 = arith.constant 0 : index
      %22 = vector.load %arg7[%c0_13, %c0_14] : memref<8x128xf32, #tpu.memory_space<vmem>>, vector<8x128xf32>
      %c0_15 = arith.constant 0 : index
      %c0_16 = arith.constant 0 : index
      %23 = vector.load %arg5[%c0_15, %c0_16] : memref<1x128xf32, #tpu.memory_space<vmem>>, vector<1x128xf32>
      %24 = vector.broadcast %23 : vector<1x128xf32> to vector<8x128xf32>
      %25 = arith.addf %22, %24 : vector<8x128xf32>
      %c0_17 = arith.constant 0 : index
      %c0_18 = arith.constant 0 : index
      %26 = vector.load %arg6[%c0_17, %c0_18] : memref<8x128xf32, #tpu.memory_space<vmem>>, vector<8x128xf32>
      tpu.vector_store %arg6[%c0_17, %c0_18], %25 {strides = array<i32>} : memref<8x128xf32, #tpu.memory_space<vmem>>, vector<8x128xf32>,
    } else {
    }
    return
  }
  func.func @transform_0(%arg0: i32, %arg1: i32, %arg2: i32) -> (i32, i32) {
    %c0_i32 = arith.constant 0 : i32
    return %arg0, %arg2 : i32, i32
  }
  func.func @transform_1(%arg0: i32, %arg1: i32, %arg2: i32) -> (i32, i32) {
    %c0_i32 = arith.constant 0 : i32
    return %arg2, %arg1 : i32, i32
  }
  func.func @transform_2(%arg0: i32, %arg1: i32, %arg2: i32) -> (i32, i32) {
    %c0_i32 = arith.constant 0 : i32
    %c0_i32_0 = arith.constant 0 : i32
    return %c0_i32, %arg1 : i32, i32
  }
  func.func @transform_3(%arg0: i32, %arg1: i32, %arg2: i32) -> (i32, i32) {
    %c0_i32 = arith.constant 0 : i32
    return %arg0, %arg1 : i32, i32
  }
}

module attributes {stable_mosaic.version = 11 : i64} {
  func.func @_mm_kernel(%arg0: i32, %arg1: i32, %arg2: i32, %arg3: memref<8x128xbf16, #tpu.memory_space<vmem>>, %arg4: memref<128x128xbf16, #tpu.memory_space<vmem>>, %arg5: memref<1x128xf32, #tpu.memory_space<vmem>>, %arg6: memref<8x128xf32, #tpu.memory_space<vmem>>, %arg7: memref<8x128xf32, #tpu.memory_space<vmem>>) attributes {dimension_semantics = [#tpu.dimension_semantics<parallel>, #tpu.dimension_semantics<parallel>, #tpu.dimension_semantics<arbitrary>], iteration_bounds = array<i64: 1, 1, 1>, scalar_prefetch = 0 : i64, scratch_operands = 1 : i64, tpu.core_type = #tpu.core_type<tc>, window_params = [{transform_indices = @transform_0, window_bounds = array<i64: 8, 128>}, {transform_indices = @transform_1, window_bounds = array<i64: 128, 128>}, {transform_indices = @transform_2, window_bounds = array<i64: 1, 128>}, {transform_indices = @transform_3, window_bounds = array<i64: 8, 128>}]} {
    %c0_i32 = arith.constant 0 : i32
    %0 = arith.cmpi eq, %arg2, %c0_i32 : i32
    %1 = arith.extui %0 : i1 to i32
    %c0_i32_0 = arith.constant 0 : i32
    %2 = arith.cmpi ne, %1, %c0_i32_0 : i32
    scf.if %2 {
      %cst_10 = arith.constant 0.000000e+00 : f32
      %12 = vector.broadcast %cst_10 : f32 to vector<8x128xf32>
      %c0_11 = arith.constant 0 : index
      %c0_12 = arith.constant 0 : index
      %13 = vector.load %arg7[%c0_11, %c0_12] : memref<8x128xf32, #tpu.memory_space<vmem>>, vector<8x128xf32>
      tpu.vector_store %arg7[%c0_11, %c0_12], %12 {strides = array<i32>} : memref<8x128xf32, #tpu.memory_space<vmem>>, vector<8x128xf32>,
    } else {
    }
    %c0 = arith.constant 0 : index
    %c0_1 = arith.constant 0 : index
    %3 = vector.load %arg3[%c0, %c0_1] : memref<8x128xbf16, #tpu.memory_space<vmem>>, vector<8x128xbf16>
    %c0_2 = arith.constant 0 : index
    %c0_3 = arith.constant 0 : index
    %4 = vector.load %arg7[%c0_2, %c0_3] : memref<8x128xf32, #tpu.memory_space<vmem>>, vector<8x128xf32>
    %c0_4 = arith.constant 0 : index
    %c0_5 = arith.constant 0 : index
    %5 = vector.load %arg4[%c0_4, %c0_5] : memref<128x128xbf16, #tpu.memory_space<vmem>>, vector<128x128xbf16>
    %cst = arith.constant dense<0.000000e+00> : vector<8x128xf32>
    %6 = tpu.matmul %3, %5, %cst {dimension_numbers = #tpu.dot_dimension_numbers<[1], [0], [0], [1], [0, 0, 1, 1], [], []>} : vector<8x128xbf16>, vector<128x128xbf16>, vector<8x128xf32> -> vector<8x128xf32>
    %7 = arith.addf %4, %6 : vector<8x128xf32>
    %c0_6 = arith.constant 0 : index
    %c0_7 = arith.constant 0 : index
    %8 = vector.load %arg7[%c0_6, %c0_7] : memref<8x128xf32, #tpu.memory_space<vmem>>, vector<8x128xf32>
    tpu.vector_store %arg7[%c0_6, %c0_7], %7 {strides = array<i32>} : memref<8x128xf32, #tpu.memory_space<vmem>>, vector<8x128xf32>,
    %c0_i32_8 = arith.constant 0 : i32
    %9 = arith.cmpi eq, %arg2, %c0_i32_8 : i32
    %10 = arith.extui %9 : i1 to i32
    %c0_i32_9 = arith.constant 0 : i32
    %11 = arith.cmpi ne, %10, %c0_i32_9 : i32
    scf.if %11 {
      %c0_10 = arith.constant 0 : index
      %c0_11 = arith.constant 0 : index
      %12 = vector.load %arg7[%c0_10, %c0_11] : memref<8x128xf32, #tpu.memory_space<vmem>>, vector<8x128xf32>
      %c0_12 = arith.constant 0 : index
      %c0_13 = arith.constant 0 : index
      %13 = vector.load %arg5[%c0_12, %c0_13] : memref<1x128xf32, #tpu.memory_space<vmem>>, vector<1x128xf32>
      %14 = vector.broadcast %13 : vector<1x128xf32> to vector<8x128xf32>
      %15 = arith.addf %12, %14 : vector<8x128xf32>
      %c0_14 = arith.constant 0 : index
      %c0_15 = arith.constant 0 : index
      %16 = vector.load %arg6[%c0_14, %c0_15] : memref<8x128xf32, #tpu.memory_space<vmem>>, vector<8x128xf32>
      tpu.vector_store %arg6[%c0_14, %c0_15], %15 {strides = array<i32>} : memref<8x128xf32, #tpu.memory_space<vmem>>, vector<8x128xf32>,
    } else {
    }
    return
  }
  func.func @transform_0(%arg0: i32, %arg1: i32, %arg2: i32) -> (i32, i32) {
    %c0_i32 = arith.constant 0 : i32
    return %arg0, %arg2 : i32, i32
  }
  func.func @transform_1(%arg0: i32, %arg1: i32, %arg2: i32) -> (i32, i32) {
    %c0_i32 = arith.constant 0 : i32
    return %arg2, %arg1 : i32, i32
  }
  func.func @transform_2(%arg0: i32, %arg1: i32, %arg2: i32) -> (i32, i32) {
    %c0_i32 = arith.constant 0 : i32
    %c0_i32_0 = arith.constant 0 : i32
    return %c0_i32, %arg1 : i32, i32
  }
  func.func @transform_3(%arg0: i32, %arg1: i32, %arg2: i32) -> (i32, i32) {
    %c0_i32 = arith.constant 0 : i32
    return %arg0, %arg1 : i32, i32
  }
}

module attributes {stable_mosaic.version = 11 : i64} {
  func.func @_lstm_seq_kernel(%arg0: i32, %arg1: memref<1x2x128xf32, #tpu.memory_space<vmem>>, %arg2: memref<32x128xf32, #tpu.memory_space<vmem>>, %arg3: memref<1x2x32xf32, #tpu.memory_space<vmem>>, %arg4: memref<2x32xf32, #tpu.memory_space<vmem>>, %arg5: memref<2x32xf32, #tpu.memory_space<vmem>>) attributes {dimension_semantics = [#tpu.dimension_semantics<arbitrary>], iteration_bounds = array<i64: 4>, scalar_prefetch = 0 : i64, scratch_operands = 2 : i64, tpu.core_type = #tpu.core_type<tc>, window_params = [{transform_indices = @transform_0, window_bounds = array<i64: 1, 2, 128>}, {pipeline_mode = #tpu.pipeline_mode<synchronous>, transform_indices = @transform_1, window_bounds = array<i64: 32, 128>}, {transform_indices = @transform_2, window_bounds = array<i64: 1, 2, 32>}]} {
    %c0_i32 = arith.constant 0 : i32
    %0 = arith.cmpi eq, %arg0, %c0_i32 : i32
    %1 = arith.extui %0 : i1 to i32
    %c0_i32_0 = arith.constant 0 : i32
    %2 = arith.cmpi ne, %1, %c0_i32_0 : i32
    scf.if %2 {
      %cst_19 = arith.constant 0.000000e+00 : f32
      %40 = vector.broadcast %cst_19 : f32 to vector<2x32xf32>
      %c0_20 = arith.constant 0 : index
      %c0_21 = arith.constant 0 : index
      %41 = vector.load %arg4[%c0_20, %c0_21] : memref<2x32xf32, #tpu.memory_space<vmem>>, vector<2x32xf32>
      tpu.vector_store %arg4[%c0_20, %c0_21], %40 {strides = array<i32>} : memref<2x32xf32, #tpu.memory_space<vmem>>, vector<2x32xf32>,
      %cst_22 = arith.constant 0.000000e+00 : f32
      %42 = vector.broadcast %cst_22 : f32 to vector<2x32xf32>
      %c0_23 = arith.constant 0 : index
      %c0_24 = arith.constant 0 : index
      %43 = vector.load %arg5[%c0_23, %c0_24] : memref<2x32xf32, #tpu.memory_space<vmem>>, vector<2x32xf32>
      tpu.vector_store %arg5[%c0_23, %c0_24], %42 {strides = array<i32>} : memref<2x32xf32, #tpu.memory_space<vmem>>, vector<2x32xf32>,
    } else {
    }
    %c0 = arith.constant 0 : index
    %c0_1 = arith.constant 0 : index
    %3 = vector.load %arg4[%c0, %c0_1] : memref<2x32xf32, #tpu.memory_space<vmem>>, vector<2x32xf32>
    %c0_2 = arith.constant 0 : index
    %c0_3 = arith.constant 0 : index
    %c0_4 = arith.constant 0 : index
    %4 = vector.load %arg1[%c0_2, %c0_3, %c0_4] : memref<1x2x128xf32, #tpu.memory_space<vmem>>, vector<1x2x128xf32>
    %5 = vector.shape_cast %4 : vector<1x2x128xf32> to vector<2x128xf32>
    %c0_5 = arith.constant 0 : index
    %c0_6 = arith.constant 0 : index
    %6 = vector.load %arg2[%c0_5, %c0_6] : memref<32x128xf32, #tpu.memory_space<vmem>>, vector<32x128xf32>
    %cst = arith.constant dense<0.000000e+00> : vector<2x128xf32>
    %7 = tpu.matmul %3, %6, %cst {dimension_numbers = #tpu.dot_dimension_numbers<[1], [0], [0], [1], [0, 0, 1, 1], [], []>} : vector<2x32xf32>, vector<32x128xf32>, vector<2x128xf32> -> vector<2x128xf32>
    %8 = arith.addf %5, %7 : vector<2x128xf32>
    %9 = vector.extract_strided_slice %8 {offsets = [0, 0], sizes = [2, 32], strides = [1, 1]} : vector<2x128xf32> to vector<2x32xf32>
    %10 = arith.negf %9 : vector<2x32xf32>
    %11 = math.exp %10 : vector<2x32xf32>
    %cst_7 = arith.constant 1.000000e+00 : f32
    %12 = vector.broadcast %cst_7 : f32 to vector<2x32xf32>
    %13 = arith.addf %12, %11 : vector<2x32xf32>
    %14 = arith.divf %12, %13 : vector<2x32xf32>
    %15 = vector.extract_strided_slice %8 {offsets = [0, 32], sizes = [2, 32], strides = [1, 1]} : vector<2x128xf32> to vector<2x32xf32>
    %16 = arith.negf %15 : vector<2x32xf32>
    %17 = math.exp %16 : vector<2x32xf32>
    %cst_8 = arith.constant 1.000000e+00 : f32
    %18 = vector.broadcast %cst_8 : f32 to vector<2x32xf32>
    %19 = arith.addf %18, %17 : vector<2x32xf32>
    %20 = arith.divf %18, %19 : vector<2x32xf32>
    %21 = vector.extract_strided_slice %8 {offsets = [0, 64], sizes = [2, 32], strides = [1, 1]} : vector<2x128xf32> to vector<2x32xf32>
    %22 = math.tanh %21 : vector<2x32xf32>
    %23 = vector.extract_strided_slice %8 {offsets = [0, 96], sizes = [2, 32], strides = [1, 1]} : vector<2x128xf32> to vector<2x32xf32>
    %24 = arith.negf %23 : vector<2x32xf32>
    %25 = math.exp %24 : vector<2x32xf32>
    %cst_9 = arith.constant 1.000000e+00 : f32
    %26 = vector.broadcast %cst_9 : f32 to vector<2x32xf32>
    %27 = arith.addf %26, %25 : vector<2x32xf32>
    %28 = arith.divf %26, %27 : vector<2x32xf32>
    %c0_10 = arith.constant 0 : index
    %c0_11 = arith.constant 0 : index
    %29 = vector.load %arg5[%c0_10, %c0_11] : memref<2x32xf32, #tpu.memory_space<vmem>>, vector<2x32xf32>
    %30 = arith.mulf %20, %29 : vector<2x32xf32>
    %31 = arith.mulf %14, %22 : vector<2x32xf32>
    %32 = arith.addf %30, %31 : vector<2x32xf32>
    %33 = math.tanh %32 : vector<2x32xf32>
    %34 = arith.mulf %28, %33 : vector<2x32xf32>
    %c0_12 = arith.constant 0 : index
    %c0_13 = arith.constant 0 : index
    %35 = vector.load %arg5[%c0_12, %c0_13] : memref<2x32xf32, #tpu.memory_space<vmem>>, vector<2x32xf32>
    tpu.vector_store %arg5[%c0_12, %c0_13], %32 {strides = array<i32>} : memref<2x32xf32, #tpu.memory_space<vmem>>, vector<2x32xf32>,
    %c0_14 = arith.constant 0 : index
    %c0_15 = arith.constant 0 : index
    %36 = vector.load %arg4[%c0_14, %c0_15] : memref<2x32xf32, #tpu.memory_space<vmem>>, vector<2x32xf32>
    tpu.vector_store %arg4[%c0_14, %c0_15], %34 {strides = array<i32>} : memref<2x32xf32, #tpu.memory_space<vmem>>, vector<2x32xf32>,
    %c0_16 = arith.constant 0 : index
    %c0_17 = arith.constant 0 : index
    %c0_18 = arith.constant 0 : index
    %37 = vector.load %arg3[%c0_16, %c0_17, %c0_18] : memref<1x2x32xf32, #tpu.memory_space<vmem>>, vector<1x2x32xf32>
    %38 = vector.shape_cast %37 : vector<1x2x32xf32> to vector<2x32xf32>
    %39 = vector.shape_cast %34 : vector<2x32xf32> to vector<1x2x32xf32>
    tpu.vector_store %arg3[%c0_16, %c0_17, %c0_18], %39 {strides = array<i32>} : memref<1x2x32xf32, #tpu.memory_space<vmem>>, vector<1x2x32xf32>,
    return
  }
  func.func @transform_0(%arg0: i32) -> (i32, i32, i32) {
    %c0_i32 = arith.constant 0 : i32
    %c0_i32_0 = arith.constant 0 : i32
    %c0_i32_1 = arith.constant 0 : i32
    return %arg0, %c0_i32, %c0_i32_0 : i32, i32, i32
  }
  func.func @transform_1(%arg0: i32) -> (i32, i32) {
    %c0_i32 = arith.constant 0 : i32
    %c0_i32_0 = arith.constant 0 : i32
    %c0_i32_1 = arith.constant 0 : i32
    return %c0_i32, %c0_i32_0 : i32, i32
  }
  func.func @transform_2(%arg0: i32) -> (i32, i32, i32) {
    %c0_i32 = arith.constant 0 : i32
    %c0_i32_0 = arith.constant 0 : i32
    %c0_i32_1 = arith.constant 0 : i32
    return %arg0, %c0_i32, %c0_i32_0 : i32, i32, i32
  }
}

module attributes {stable_mosaic.version = 11 : i64} {
  func.func @_mm_kernel(%arg0: i32, %arg1: i32, %arg2: i32, %arg3: memref<8x128xbf16, #tpu.memory_space<vmem>>, %arg4: memref<128x128xbf16, #tpu.memory_space<vmem>>, %arg5: memref<1x128xf32, #tpu.memory_space<vmem>>, %arg6: memref<8x128xf32, #tpu.memory_space<vmem>>, %arg7: memref<8x128xf32, #tpu.memory_space<vmem>>) attributes {dimension_semantics = [#tpu.dimension_semantics<parallel>, #tpu.dimension_semantics<parallel>, #tpu.dimension_semantics<arbitrary>], iteration_bounds = array<i64: 1, 1, 1>, scalar_prefetch = 0 : i64, scratch_operands = 1 : i64, tpu.core_type = #tpu.core_type<tc>, window_params = [{transform_indices = @transform_0, window_bounds = array<i64: 8, 128>}, {transform_indices = @transform_1, window_bounds = array<i64: 128, 128>}, {transform_indices = @transform_2, window_bounds = array<i64: 1, 128>}, {transform_indices = @transform_3, window_bounds = array<i64: 8, 128>}]} {
    %c0_i32 = arith.constant 0 : i32
    %0 = arith.cmpi eq, %arg2, %c0_i32 : i32
    %1 = arith.extui %0 : i1 to i32
    %c0_i32_0 = arith.constant 0 : i32
    %2 = arith.cmpi ne, %1, %c0_i32_0 : i32
    scf.if %2 {
      %cst_13 = arith.constant 0.000000e+00 : f32
      %22 = vector.broadcast %cst_13 : f32 to vector<8x128xf32>
      %c0_14 = arith.constant 0 : index
      %c0_15 = arith.constant 0 : index
      %23 = vector.load %arg7[%c0_14, %c0_15] : memref<8x128xf32, #tpu.memory_space<vmem>>, vector<8x128xf32>
      tpu.vector_store %arg7[%c0_14, %c0_15], %22 {strides = array<i32>} : memref<8x128xf32, #tpu.memory_space<vmem>>, vector<8x128xf32>,
    } else {
    }
    %c0 = arith.constant 0 : index
    %c0_1 = arith.constant 0 : index
    %3 = vector.load %arg3[%c0, %c0_1] : memref<8x128xbf16, #tpu.memory_space<vmem>>, vector<8x128xbf16>
    %4 = arith.extf %3 : vector<8x128xbf16> to vector<8x128xf32>
    %cst = arith.constant 0.000000e+00 : f32
    %5 = vector.broadcast %cst : f32 to vector<8x128xf32>
    %6 = arith.cmpf ogt, %4, %5 : vector<8x128xf32>
    %cst_2 = arith.constant 0.000000e+00 : f32
    %7 = vector.broadcast %cst_2 : f32 to vector<8x128xf32>
    %8 = arith.minimumf %4, %7 : vector<8x128xf32>
    %9 = math.exp %8 : vector<8x128xf32>
    %cst_3 = arith.constant 1.000000e+00 : f32
    %10 = vector.broadcast %cst_3 : f32 to vector<8x128xf32>
    %11 = arith.subf %9, %10 : vector<8x128xf32>
    %12 = arith.select %6, %4, %11 : vector<8x128xi1>, vector<8x128xf32>
    %13 = arith.truncf %12 : vector<8x128xf32> to vector<8x128xbf16>
    %c0_4 = arith.constant 0 : index
    %c0_5 = arith.constant 0 : index
    %14 = vector.load %arg7[%c0_4, %c0_5] : memref<8x128xf32, #tpu.memory_space<vmem>>, vector<8x128xf32>
    %c0_6 = arith.constant 0 : index
    %c0_7 = arith.constant 0 : index
    %15 = vector.load %arg4[%c0_6, %c0_7] : memref<128x128xbf16, #tpu.memory_space<vmem>>, vector<128x128xbf16>
    %cst_8 = arith.constant dense<0.000000e+00> : vector<8x128xf32>
    %16 = tpu.matmul %13, %15, %cst_8 {dimension_numbers = #tpu.dot_dimension_numbers<[1], [0], [0], [1], [0, 0, 1, 1], [], []>} : vector<8x128xbf16>, vector<128x128xbf16>, vector<8x128xf32> -> vector<8x128xf32>
    %17 = arith.addf %14, %16 : vector<8x128xf32>
    %c0_9 = arith.constant 0 : index
    %c0_10 = arith.constant 0 : index
    %18 = vector.load %arg7[%c0_9, %c0_10] : memref<8x128xf32, #tpu.memory_space<vmem>>, vector<8x128xf32>
    tpu.vector_store %arg7[%c0_9, %c0_10], %17 {strides = array<i32>} : memref<8x128xf32, #tpu.memory_space<vmem>>, vector<8x128xf32>,
    %c0_i32_11 = arith.constant 0 : i32
    %19 = arith.cmpi eq, %arg2, %c0_i32_11 : i32
    %20 = arith.extui %19 : i1 to i32
    %c0_i32_12 = arith.constant 0 : i32
    %21 = arith.cmpi ne, %20, %c0_i32_12 : i32
    scf.if %21 {
      %c0_13 = arith.constant 0 : index
      %c0_14 = arith.constant 0 : index
      %22 = vector.load %arg7[%c0_13, %c0_14] : memref<8x128xf32, #tpu.memory_space<vmem>>, vector<8x128xf32>
      %c0_15 = arith.constant 0 : index
      %c0_16 = arith.constant 0 : index
      %23 = vector.load %arg5[%c0_15, %c0_16] : memref<1x128xf32, #tpu.memory_space<vmem>>, vector<1x128xf32>
      %24 = vector.broadcast %23 : vector<1x128xf32> to vector<8x128xf32>
      %25 = arith.addf %22, %24 : vector<8x128xf32>
      %c0_17 = arith.constant 0 : index
      %c0_18 = arith.constant 0 : index
      %26 = vector.load %arg6[%c0_17, %c0_18] : memref<8x128xf32, #tpu.memory_space<vmem>>, vector<8x128xf32>
      tpu.vector_store %arg6[%c0_17, %c0_18], %25 {strides = array<i32>} : memref<8x128xf32, #tpu.memory_space<vmem>>, vector<8x128xf32>,
    } else {
    }
    return
  }
  func.func @transform_0(%arg0: i32, %arg1: i32, %arg2: i32) -> (i32, i32) {
    %c0_i32 = arith.constant 0 : i32
    return %arg0, %arg2 : i32, i32
  }
  func.func @transform_1(%arg0: i32, %arg1: i32, %arg2: i32) -> (i32, i32) {
    %c0_i32 = arith.constant 0 : i32
    return %arg2, %arg1 : i32, i32
  }
  func.func @transform_2(%arg0: i32, %arg1: i32, %arg2: i32) -> (i32, i32) {
    %c0_i32 = arith.constant 0 : i32
    %c0_i32_0 = arith.constant 0 : i32
    return %c0_i32, %arg1 : i32, i32
  }
  func.func @transform_3(%arg0: i32, %arg1: i32, %arg2: i32) -> (i32, i32) {
    %c0_i32 = arith.constant 0 : i32
    return %arg0, %arg1 : i32, i32
  }
}

</mosaic_0001>

<bundles_post_ra>
// kernel: seanet_encoder2d_forward.12
= control target key start
LH: loop header
LB: loop body
LE: loop exit
PB: predicated region body
PF: predicated region fallthrough
CT: control target
= control target key end

     0   :  { %s410_s1 = inlined_call_operand.vmem [shape: bf16[128,128], index: 1, kind: input, shape index: {}]   ;;  %s411_s0 = inlined_call_operand.vmem [shape: bf16[64,128], index: 0, kind: input, shape index: {}]   ;;  %s412_s2 = inlined_call_operand.vmem [shape: f32[1,128], index: 2, kind: input, shape index: {}]   ;;  %s413_s3 = inlined_call_operand.vmem [shape: f32[64,128], index: 3, kind: output, shape index: {}]  }
   0x1   :  { %v315_v0 = vld [vmem:[%s410_s1] sm:$0xff]   ;;  %v316_v1 = vld [vmem:[%s410_s1 + $0x8] sm:$0xff]   ;;  %v317_v2 = vld [vmem:[%s410_s1 + $0x10] sm:$0xff]  }
   0x2   :  { %275 = vmatprep.subr.bf16.mxu0 %v315_v0  ;;  %299 = vmatprep.subr.bf16.mxu1 %v315_v0  ;;  %v318_v3 = vld [vmem:[%s410_s1 + $0x18] sm:$0xff]   ;;  %v323_v4 = vld [vmem:[%s411_s0] sm:$0xff]   ;;  %v324_v5 = vld [vmem:[%s411_s0 + $0x10] sm:$0xff]  }
   0x3   :  { %276 = vmatpush3.bf16.msra.mxu0 %v315_v0  ;;  %307 = vmatpush3.bf16.msra.mxu1 %v315_v0  ;;  %v319_v6 = vld [vmem:[%s410_s1 + $0x20] sm:$0xff]   ;;  %v320_v7 = vld [vmem:[%s410_s1 + $0x28] sm:$0xff]   ;;  %v321_v8 = vld [vmem:[%s410_s1 + $0x30] sm:$0xff]  }
   0x4   :  { %277 = vmatprep.subr.bf16.mxu0 %v316_v1  ;;  %300 = vmatprep.subr.bf16.mxu1 %v316_v1  ;;  %v322_v9 = vld [vmem:[%s410_s1 + $0x38] sm:$0xff]   ;;  %v325_v10 = vld [vmem:[%s411_s0 + $0x8] sm:$0xff]   ;;  %v262_v12 = vld [vmem:[%s412_s2] ss:$0 sm:$0xff] }
   0x5   :  { %291 = vmatprep.mubr.bf16.mxu0 %v323_v4  ;;  %295 = vmatprep.mubr.bf16.mxu1 %v324_v5  ;;  %v326_v11 = vld [vmem:[%s411_s0 + $0x18] sm:$0xff]  }
   0x7   :  { %278 = vmatpush3.bf16.msra.mxu0 %v316_v1  ;;  %308 = vmatpush3.bf16.msra.mxu1 %v316_v1 }
   0x8   :  { %279 = vmatprep.subr.bf16.mxu0 %v317_v2  ;;  %301 = vmatprep.subr.bf16.mxu1 %v317_v2 }
   0xb   :  { %280 = vmatpush3.bf16.msra.mxu0 %v317_v2  ;;  %309 = vmatpush3.bf16.msra.mxu1 %v317_v2 }
   0xc   :  { %281 = vmatprep.subr.bf16.mxu0 %v318_v3  ;;  %302 = vmatprep.subr.bf16.mxu1 %v318_v3 }
   0xf   :  { %282 = vmatpush3.bf16.msra.mxu0 %v318_v3  ;;  %310 = vmatpush3.bf16.msra.mxu1 %v318_v3 }
  0x10   :  { %283 = vmatprep.subr.bf16.mxu0 %v319_v6  ;;  %303 = vmatprep.subr.bf16.mxu1 %v319_v6 }
  0x13   :  { %284 = vmatpush3.bf16.msra.mxu0 %v319_v6  ;;  %311 = vmatpush3.bf16.msra.mxu1 %v319_v6 }
  0x14   :  { %285 = vmatprep.subr.bf16.mxu0 %v320_v7  ;;  %304 = vmatprep.subr.bf16.mxu1 %v320_v7 }
  0x17   :  { %286 = vmatpush3.bf16.msra.mxu0 %v320_v7  ;;  %312 = vmatpush3.bf16.msra.mxu1 %v320_v7 }
  0x18   :  { %287 = vmatprep.subr.bf16.mxu0 %v321_v8  ;;  %305 = vmatprep.subr.bf16.mxu1 %v321_v8 }
  0x1b   :  { %288 = vmatpush3.bf16.msra.mxu0 %v321_v8  ;;  %313 = vmatpush3.bf16.msra.mxu1 %v321_v8 }
  0x1c   :  { %289 = vmatprep.subr.bf16.mxu0 %v322_v9  ;;  %306 = vmatprep.subr.bf16.mxu1 %v322_v9 }
  0x1f   :  { %290 = vmatpush3.bf16.msra.mxu0 %v322_v9  ;;  %314 = vmatpush3.bf16.msra.mxu1 %v322_v9 }
  0x22   :  { %292 = vmatmul.mubr.bf16.vlgmr.msra.gmra.mrb[0].mxu0 %v325_v10  ;;  %296 = vmatmul.mubr.bf16.vlgmr.msra.gmra.mrb[0].mxu1 %v326_v11 }
  0xf5   :  { %v293_v13 = vpop.f32.mrb[0].mxu0  ;;  %v297_v14 = vpop.f32.mrb[0].mxu1 }
  0xf6   :  { %v232_v15 = vadd.f32 %v293_v13, %v262_v12  ;;  %v236_v16 = vadd.f32 %v297_v14, %v262_v12  ;;  %v165_v17 = vpop.f32.mrb[1].mxu0  ;;  %v181_v18 = vpop.f32.mrb[1].mxu1 }
  0xf7   :  { %v230_v19 = vadd.f32 %v262_v12, %v165_v17  ;;  %v234_v20 = vadd.f32 %v262_v12, %v181_v18  ;;  %v294_v21 = vpop.f32.mrb[2].mxu0  ;;  %v298_v22 = vpop.f32.mrb[2].mxu1 }
  0xf8   :  { %240 = vst [vmem:[%s413_s3 + $0x10] sm:$0xff] %v232_v15  ;;  %244 = vst [vmem:[%s413_s3 + $0x30] sm:$0xff] %v236_v16  ;;  %v233_v23 = vadd.f32 %v294_v21, %v262_v12  ;;  %v237_v24 = vadd.f32 %v298_v22, %v262_v12  ;;  %v168_v25 = vpop.f32.mrb[3].mxu0  ;;  %v184_v26 = vpop.f32.mrb[3].mxu1 }
  0xf9   :  { %238 = vst [vmem:[%s413_s3] sm:$0xff] %v230_v19  ;;  %242 = vst [vmem:[%s413_s3 + $0x20] sm:$0xff] %v234_v20  ;;  %v231_v27 = vadd.f32 %v262_v12, %v168_v25  ;;  %v235_v28 = vadd.f32 %v262_v12, %v184_v26 }
  0xfa   :  { %241 = vst [vmem:[%s413_s3 + $0x18] sm:$0xff] %v233_v23  ;;  %245 = vst [vmem:[%s413_s3 + $0x38] sm:$0xff] %v237_v24 }
  0xfb   :  { %239 = vst [vmem:[%s413_s3 + $0x8] sm:$0xff] %v231_v27  ;;  %243 = vst [vmem:[%s413_s3 + $0x28] sm:$0xff] %v235_v28 }

// kernel: seanet_encoder2d_forward.13
= control target key start
LH: loop header
LB: loop body
LE: loop exit
PB: predicated region body
PF: predicated region fallthrough
CT: control target
= control target key end

     0   :  { %s521_s1 = inlined_call_operand.vmem [shape: bf16[128,128], index: 1, kind: input, shape index: {}]   ;;  %s522_s0 = inlined_call_operand.vmem [shape: bf16[64,128], index: 0, kind: input, shape index: {}]   ;;  %s523_s2 = inlined_call_operand.vmem [shape: f32[1,128], index: 2, kind: input, shape index: {}]   ;;  %s524_s3 = inlined_call_operand.vmem [shape: f32[64,128], index: 3, kind: output, shape index: {}]  }
   0x1   :  { %v374_v0 = vld [vmem:[%s521_s1] sm:$0xff]   ;;  %v375_v1 = vld [vmem:[%s521_s1 + $0x8] sm:$0xff]   ;;  %v376_v2 = vld [vmem:[%s521_s1 + $0x10] sm:$0xff]  }
   0x2   :  { %334 = vmatprep.subr.bf16.mxu0 %v374_v0  ;;  %358 = vmatprep.subr.bf16.mxu1 %v374_v0  ;;  %v377_v3 = vld [vmem:[%s521_s1 + $0x18] sm:$0xff]   ;;  %v304_v4 = vld [vmem:[%s522_s0] sm:$0xff]   ;;  %v320_v5 = vld [vmem:[%s522_s0 + $0x10] sm:$0xff]  }
   0x3   :  { %335 = vmatpush3.bf16.msra.mxu0 %v374_v0  ;;  %366 = vmatpush3.bf16.msra.mxu1 %v374_v0  ;;  %v319_v6 = vld [vmem:[%s522_s0 + $0x8] sm:$0xff]   ;;  %v439_v7 = vunpack.c.l.bf16 %v304_v4  ;;  %v441_v8 = vunpack.c.h.bf16 %v304_v4  ;;  %v443_v9 = vunpack.c.l.bf16 %v320_v5  ;;  %v445_v10 = vunpack.c.h.bf16 %v320_v5  ;;  %v321_v11 = vld [vmem:[%s522_s0 + $0x18] sm:$0xff]   ;;  %v378_v17 = vld [vmem:[%s521_s1 + $0x20] sm:$0xff]  }
   0x4   :  { %336 = vmatprep.subr.bf16.mxu0 %v375_v1  ;;  %359 = vmatprep.subr.bf16.mxu1 %v375_v1  ;;  %v450_v12 = vunpack.c.l.bf16 %v319_v6  ;;  %v452_v13 = vunpack.c.h.bf16 %v319_v6  ;;  %v456_v16 = vunpack.c.l.bf16 %v321_v11  ;;  %v463_v20 = vunpack.c.h.bf16 %v321_v11  ;;  %v379_v28 = vld [vmem:[%s521_s1 + $0x28] sm:$0xff]   ;;  %v380_v34 = vld [vmem:[%s521_s1 + $0x30] sm:$0xff]   ;;  %v381_v35 = vld [vmem:[%s521_s1 + $0x38] sm:$0xff]  }
   0x5   :  { %v51_v14 = vmin.f32 %v439_v7, 0.0  ;;  %v52_v15 = vmin.f32 %v441_v8, 0.0  ;;  %v55_v18 = vmin.f32 %v443_v9, 0.0  ;;  %v56_v19 = vmin.f32 %v445_v10, 0.0  ;;  %v302_v0 = vld [vmem:[%s523_s2] ss:$0 sm:$0xff] }
   0x6   :  { %v53_v25 = vmin.f32 %v450_v12, 0.0  ;;  %v54_v26 = vmin.f32 %v452_v13, 0.0  ;;  %v57_v27 = vmin.f32 %v456_v16, 0.0  ;;  %v58_v31 = vmin.f32 %v463_v20, 0.0 }
   0x7   :  { %337 = vmatpush3.bf16.msra.mxu0 %v375_v1  ;;  %367 = vmatpush3.bf16.msra.mxu1 %v375_v1  ;;  %v59_v21 = vmul.f32 1.442695, %v51_v14  ;;  %v61_v22 = vmul.f32 1.442695, %v52_v15  ;;  %v67_v23 = vmul.f32 1.442695, %v55_v18 }
   0x8   :  { %338 = vmatprep.subr.bf16.mxu0 %v376_v2  ;;  %360 = vmatprep.subr.bf16.mxu1 %v376_v2  ;;  %v69_v24 = vmul.f32 1.442695, %v56_v19  ;;  %v63_v29 = vmul.f32 1.442695, %v53_v25  ;;  %v65_v30 = vmul.f32 1.442695, %v54_v26 }
   0x9   :  { %382 = vpow2.f32 %v59_v21  ;;  %v71_v32 = vmul.f32 1.442695, %v57_v27  ;;  %v73_v33 = vmul.f32 1.442695, %v58_v31  ;;  %vm43_vm0 = vcmp.gt.f32.partialorder %v439_v7, 0.0 }
   0xa   :  { %384 = vpow2.f32 %v61_v22  ;;  %vm44_vm1 = vcmp.gt.f32.partialorder %v441_v8, 0.0  ;;  %vm47_vm2 = vcmp.gt.f32.partialorder %v443_v9, 0.0  ;;  %vm48_vm3 = vcmp.gt.f32.partialorder %v445_v10, 0.0 }
   0xb   :  { %339 = vmatpush3.bf16.msra.mxu0 %v376_v2  ;;  %368 = vmatpush3.bf16.msra.mxu1 %v376_v2  ;;  %386 = vpow2.f32 %v67_v23  ;;  %vm45_vm4 = vcmp.gt.f32.partialorder %v450_v12, 0.0  ;;  %vm46_vm5 = vcmp.gt.f32.partialorder %v452_v13, 0.0  ;;  %vm49_vm6 = vcmp.gt.f32.partialorder %v456_v16, 0.0 }
   0xc   :  { %340 = vmatprep.subr.bf16.mxu0 %v377_v3  ;;  %361 = vmatprep.subr.bf16.mxu1 %v377_v3  ;;  %388 = vpow2.f32 %v69_v24  ;;  %vm50_vm7 = vcmp.gt.f32.partialorder %v463_v20, 0.0 }
   0xd   :  { %390 = vpow2.f32 %v63_v29 }
   0xe   :  { %392 = vpow2.f32 %v65_v30 }
   0xf   :  { %341 = vmatpush3.bf16.msra.mxu0 %v377_v3  ;;  %369 = vmatpush3.bf16.msra.mxu1 %v377_v3  ;;  %394 = vpow2.f32 %v71_v32 }
  0x10   :  { %342 = vmatprep.subr.bf16.mxu0 %v378_v17  ;;  %362 = vmatprep.subr.bf16.mxu1 %v378_v17  ;;  %396 = vpow2.f32 %v73_v33 }
  0x13   :  { %343 = vmatpush3.bf16.msra.mxu0 %v378_v17  ;;  %370 = vmatpush3.bf16.msra.mxu1 %v378_v17  ;;  %v383_v36 = vpop.eup %382 }
  0x14   :  { %344 = vmatprep.subr.bf16.mxu0 %v379_v28  ;;  %363 = vmatprep.subr.bf16.mxu1 %v379_v28  ;;  %v385_v37 = vpop.eup %384  ;;  %v286_v38 = vadd.f32 -1.0, %v383_v36 }
  0x15   :  { %v387_v39 = vpop.eup %386  ;;  %v287_v40 = vadd.f32 -1.0, %v385_v37 }
  0x16   :  { %v389_v41 = vpop.eup %388  ;;  %v83_v42 = vsel %vm43_vm0, %v439_v7, %v286_v38  ;;  %v290_v43 = vadd.f32 -1.0, %v387_v39 }
  0x17   :  { %345 = vmatpush3.bf16.msra.mxu0 %v379_v28  ;;  %371 = vmatpush3.bf16.msra.mxu1 %v379_v28  ;;  %v391_v44 = vpop.eup %390  ;;  %v84_v45 = vsel %vm44_vm1, %v441_v8, %v287_v40  ;;  %v291_v46 = vadd.f32 -1.0, %v389_v41 }
  0x18   :  { %346 = vmatprep.subr.bf16.mxu0 %v380_v34  ;;  %364 = vmatprep.subr.bf16.mxu1 %v380_v34  ;;  %v393_v47 = vpop.eup %392  ;;  %v91_v48 = vpack.c.bf16 %v84_v45, %v83_v42  ;;  %v87_v49 = vsel %vm47_vm2, %v443_v9, %v290_v43  ;;  %v288_v50 = vadd.f32 -1.0, %v391_v44 }
  0x19   :  { %v395_v51 = vpop.eup %394  ;;  %v88_v52 = vsel %vm48_vm3, %v445_v10, %v291_v46  ;;  %v289_v53 = vadd.f32 -1.0, %v393_v47 }
  0x1a   :  { %v397_v54 = vpop.eup %396  ;;  %350 = vmatprep.mubr.bf16.mxu0 %v91_v48  ;;  %v93_v55 = vpack.c.bf16 %v88_v52, %v87_v49  ;;  %v85_v56 = vsel %vm45_vm4, %v450_v12, %v288_v50  ;;  %v292_v57 = vadd.f32 -1.0, %v395_v51 }
  0x1b   :  { %347 = vmatpush3.bf16.msra.mxu0 %v380_v34  ;;  %372 = vmatpush3.bf16.msra.mxu1 %v380_v34  ;;  %v86_v58 = vsel %vm46_vm5, %v452_v13, %v289_v53  ;;  %v293_v59 = vadd.f32 -1.0, %v397_v54 }
  0x1c   :  { %348 = vmatprep.subr.bf16.mxu0 %v381_v35  ;;  %365 = vmatprep.subr.bf16.mxu1 %v381_v35  ;;  %v92_v60 = vpack.c.bf16 %v86_v58, %v85_v56  ;;  %v89_v61 = vsel %vm49_vm6, %v456_v16, %v292_v57 }
  0x1d   :  { %354 = vmatprep.mubr.bf16.mxu1 %v93_v55  ;;  %v90_v62 = vsel %vm50_vm7, %v463_v20, %v293_v59 }
  0x1e   :  { %v94_v63 = vpack.c.bf16 %v90_v62, %v89_v61 }
  0x1f   :  { %349 = vmatpush3.bf16.msra.mxu0 %v381_v35  ;;  %373 = vmatpush3.bf16.msra.mxu1 %v381_v35 }
  0x22   :  { %351 = vmatmul.mubr.bf16.vlgmr.msra.gmra.mrb[0].mxu0 %v92_v60  ;;  %355 = vmatmul.mubr.bf16.vlgmr.msra.gmra.mrb[0].mxu1 %v94_v63 }
  0xf5   :  { %v352_v1 = vpop.f32.mrb[0].mxu0  ;;  %v356_v4 = vpop.f32.mrb[0].mxu1 }
  0xf6   :  { %v268_v2 = vadd.f32 %v352_v1, %v302_v0  ;;  %v201_v3 = vpop.f32.mrb[1].mxu0  ;;  %v272_v7 = vadd.f32 %v356_v4, %v302_v0  ;;  %v217_v8 = vpop.f32.mrb[1].mxu1 }
  0xf7   :  { %v266_v5 = vadd.f32 %v302_v0, %v201_v3  ;;  %v353_v6 = vpop.f32.mrb[2].mxu0  ;;  %v270_v11 = vadd.f32 %v302_v0, %v217_v8  ;;  %v357_v12 = vpop.f32.mrb[2].mxu1 }
  0xf8   :  { %276 = vst [vmem:[%s524_s3 + $0x10] sm:$0xff] %v268_v2  ;;  %v269_v9 = vadd.f32 %v353_v6, %v302_v0  ;;  %v204_v10 = vpop.f32.mrb[3].mxu0  ;;  %280 = vst [vmem:[%s524_s3 + $0x30] sm:$0xff] %v272_v7  ;;  %v273_v14 = vadd.f32 %v357_v12, %v302_v0  ;;  %v220_v15 = vpop.f32.mrb[3].mxu1 }
  0xf9   :  { %274 = vst [vmem:[%s524_s3] sm:$0xff] %v266_v5  ;;  %v267_v13 = vadd.f32 %v302_v0, %v204_v10  ;;  %278 = vst [vmem:[%s524_s3 + $0x20] sm:$0xff] %v270_v11  ;;  %v271_v16 = vadd.f32 %v302_v0, %v220_v15 }
  0xfa   :  { %277 = vst [vmem:[%s524_s3 + $0x18] sm:$0xff] %v269_v9  ;;  %281 = vst [vmem:[%s524_s3 + $0x38] sm:$0xff] %v273_v14 }
  0xfb   :  { %275 = vst [vmem:[%s524_s3 + $0x8] sm:$0xff] %v267_v13  ;;  %279 = vst [vmem:[%s524_s3 + $0x28] sm:$0xff] %v271_v16 }

// kernel: seanet_encoder2d_forward.14
= control target key start
LH: loop header
LB: loop body
LE: loop exit
PB: predicated region body
PF: predicated region fallthrough
CT: control target
= control target key end

     0   :  { %s739_s3 = inlined_call_operand.vmem [shape: bf16[128,128], index: 3, kind: input, shape index: {}]   ;;  %s740_s2 = inlined_call_operand.vmem [shape: bf16[128,128], index: 2, kind: input, shape index: {}]   ;;  %s741_s1 = inlined_call_operand.vmem [shape: bf16[64,128], index: 1, kind: input, shape index: {}]   ;;  %s742_s0 = inlined_call_operand.vmem [shape: bf16[64,128], index: 0, kind: input, shape index: {}]   ;;  %s743_s4 = inlined_call_operand.vmem [shape: f32[1,128], index: 4, kind: input, shape index: {}]   ;;  %s744_s5 = inlined_call_operand.vmem [shape: f32[64,128], index: 5, kind: output, shape index: {}]  }
   0x1   :  { %v534_v0 = vld [vmem:[%s739_s3] sm:$0xff]   ;;  %v536_v2 = vld [vmem:[%s739_s3 + $0x8] sm:$0xff]   ;;  %v538_v4 = vld [vmem:[%s739_s3 + $0x10] sm:$0xff]  }
   0x2   :  { %v535_v1 = vld [vmem:[%s740_s2] sm:$0xff]   ;;  %478 = vmatprep.subr.bf16.mxu1 %v534_v0  ;;  %v537_v3 = vld [vmem:[%s740_s2 + $0x8] sm:$0xff]   ;;  %v539_v5 = vld [vmem:[%s740_s2 + $0x10] sm:$0xff]  }
   0x3   :  { %502 = vmatprep.subr.bf16.mxu0 %v535_v1  ;;  %479 = vmatpush3.bf16.msra.mxu1 %v534_v0  ;;  %v540_v6 = vld [vmem:[%s739_s3 + $0x18] sm:$0xff]   ;;  %v542_v8 = vld [vmem:[%s739_s3 + $0x20] sm:$0xff]   ;;  %v544_v10 = vld [vmem:[%s739_s3 + $0x28] sm:$0xff]  }
   0x4   :  { %503 = vmatpush3.bf16.msra.mxu0 %v535_v1  ;;  %480 = vmatprep.subr.bf16.mxu1 %v536_v2  ;;  %v541_v7 = vld [vmem:[%s740_s2 + $0x18] sm:$0xff]   ;;  %v543_v9 = vld [vmem:[%s740_s2 + $0x20] sm:$0xff]   ;;  %v545_v11 = vld [vmem:[%s740_s2 + $0x28] sm:$0xff]  }
   0x5   :  { %504 = vmatprep.subr.bf16.mxu0 %v537_v3  ;;  %v550_v12 = vld [vmem:[%s741_s1] sm:$0xff]   ;;  %v451_v16 = vld [vmem:[%s742_s0 + $0x8] sm:$0xff]   ;;  %v452_v19 = vld [vmem:[%s742_s0 + $0x10] sm:$0xff]  }
   0x6   :  { %v436_v13 = vld [vmem:[%s742_s0] sm:$0xff]   ;;  %494 = vmatprep.mubr.bf16.mxu1 %v550_v12  ;;  %v649_v17 = vunpack.c.l.bf16 %v451_v16  ;;  %v651_v18 = vunpack.c.h.bf16 %v451_v16  ;;  %v546_v20 = vld [vmem:[%s739_s3 + $0x30] sm:$0xff]   ;;  %v666_v28 = vunpack.c.l.bf16 %v452_v19  ;;  %v668_v29 = vunpack.c.h.bf16 %v452_v19  ;;  %v453_v30 = vld [vmem:[%s742_s0 + $0x18] sm:$0xff]  }
   0x7   :  { %481 = vmatpush3.bf16.msra.mxu1 %v536_v2  ;;  %v642_v14 = vunpack.c.l.bf16 %v436_v13  ;;  %v644_v15 = vunpack.c.h.bf16 %v436_v13  ;;  %v547_v23 = vld [vmem:[%s740_s2 + $0x30] sm:$0xff]   ;;  %v673_v33 = vunpack.c.l.bf16 %v453_v30  ;;  %v675_v34 = vunpack.c.h.bf16 %v453_v30  ;;  %v548_v35 = vld [vmem:[%s739_s3 + $0x38] sm:$0xff]   ;;  %v551_v45 = vld [vmem:[%s741_s1 + $0x8] sm:$0xff]  }
   0x8   :  { %505 = vmatpush3.bf16.msra.mxu0 %v537_v3  ;;  %482 = vmatprep.subr.bf16.mxu1 %v538_v4  ;;  %v47_v24 = vmin.f32 %v649_v17, 0.0  ;;  %v48_v25 = vmin.f32 %v651_v18, 0.0  ;;  %v49_v36 = vmin.f32 %v666_v28, 0.0  ;;  %v549_v37 = vld [vmem:[%s740_s2 + $0x38] sm:$0xff]   ;;  %v50_v38 = vmin.f32 %v668_v29, 0.0  ;;  %v552_v46 = vld [vmem:[%s741_s1 + $0x10] sm:$0xff]  }
   0x9   :  { %506 = vmatprep.subr.bf16.mxu0 %v539_v5  ;;  %v45_v21 = vmin.f32 %v642_v14, 0.0  ;;  %v46_v22 = vmin.f32 %v644_v15, 0.0  ;;  %v51_v40 = vmin.f32 %v673_v33, 0.0  ;;  %v52_v41 = vmin.f32 %v675_v34, 0.0  ;;  %v553_v58 = vld [vmem:[%s741_s1 + $0x18] sm:$0xff]  }
   0xa   :  { %v57_v31 = vmul.f32 1.442695, %v47_v24  ;;  %v59_v32 = vmul.f32 1.442695, %v48_v25  ;;  %v61_v39 = vmul.f32 1.442695, %v49_v36 }
   0xb   :  { %483 = vmatpush3.bf16.msra.mxu1 %v538_v4  ;;  %v53_v26 = vmul.f32 1.442695, %v45_v21  ;;  %v55_v27 = vmul.f32 1.442695, %v46_v22  ;;  %v63_v42 = vmul.f32 1.442695, %v50_v38 }
   0xc   :  { %507 = vmatpush3.bf16.msra.mxu0 %v539_v5  ;;  %484 = vmatprep.subr.bf16.mxu1 %v540_v6  ;;  %v65_v43 = vmul.f32 1.442695, %v51_v40  ;;  %v67_v44 = vmul.f32 1.442695, %v52_v41  ;;  %vm37_vm0 = vcmp.gt.f32.partialorder %v642_v14, 0.0  ;;  %vm38_vm1 = vcmp.gt.f32.partialorder %v644_v15, 0.0 }
   0xd   :  { %508 = vmatprep.subr.bf16.mxu0 %v541_v7  ;;  %554 = vpow2.f32 %v53_v26  ;;  %vm39_vm2 = vcmp.gt.f32.partialorder %v649_v17, 0.0  ;;  %vm40_vm3 = vcmp.gt.f32.partialorder %v651_v18, 0.0  ;;  %vm41_vm4 = vcmp.gt.f32.partialorder %v666_v28, 0.0 }
   0xe   :  { %556 = vpow2.f32 %v55_v27  ;;  %vm42_vm5 = vcmp.gt.f32.partialorder %v668_v29, 0.0  ;;  %vm43_vm6 = vcmp.gt.f32.partialorder %v673_v33, 0.0  ;;  %vm44_vm7 = vcmp.gt.f32.partialorder %v675_v34, 0.0 }
   0xf   :  { %485 = vmatpush3.bf16.msra.mxu1 %v540_v6  ;;  %558 = vpow2.f32 %v57_v31 }
  0x10   :  { %509 = vmatpush3.bf16.msra.mxu0 %v541_v7  ;;  %486 = vmatprep.subr.bf16.mxu1 %v542_v8  ;;  %560 = vpow2.f32 %v59_v32 }
  0x11   :  { %510 = vmatprep.subr.bf16.mxu0 %v543_v9  ;;  %562 = vpow2.f32 %v61_v39 }
  0x12   :  { %564 = vpow2.f32 %v63_v42 }
  0x13   :  { %487 = vmatpush3.bf16.msra.mxu1 %v542_v8  ;;  %566 = vpow2.f32 %v65_v43 }
  0x14   :  { %511 = vmatpush3.bf16.msra.mxu0 %v543_v9  ;;  %488 = vmatprep.subr.bf16.mxu1 %v544_v10  ;;  %568 = vpow2.f32 %v67_v44 }
  0x15   :  { %512 = vmatprep.subr.bf16.mxu0 %v545_v11 }
  0x17   :  { %489 = vmatpush3.bf16.msra.mxu1 %v544_v10  ;;  %v555_v47 = vpop.eup %554 }
  0x18   :  { %513 = vmatpush3.bf16.msra.mxu0 %v545_v11  ;;  %490 = vmatprep.subr.bf16.mxu1 %v546_v20  ;;  %v557_v48 = vpop.eup %556  ;;  %v406_v49 = vadd.f32 -1.0, %v555_v47 }
  0x19   :  { %514 = vmatprep.subr.bf16.mxu0 %v547_v23  ;;  %v559_v50 = vpop.eup %558  ;;  %v407_v51 = vadd.f32 -1.0, %v557_v48 }
  0x1a   :  { %v561_v52 = vpop.eup %560  ;;  %v77_v53 = vsel %vm37_vm0, %v642_v14, %v406_v49  ;;  %v408_v54 = vadd.f32 -1.0, %v559_v50 }
  0x1b   :  { %491 = vmatpush3.bf16.msra.mxu1 %v546_v20  ;;  %v563_v55 = vpop.eup %562  ;;  %v78_v56 = vsel %vm38_vm1, %v644_v15, %v407_v51  ;;  %v409_v57 = vadd.f32 -1.0, %v561_v52 }
  0x1c   :  { %515 = vmatpush3.bf16.msra.mxu0 %v547_v23  ;;  %492 = vmatprep.subr.bf16.mxu1 %v548_v35  ;;  %v565_v59 = vpop.eup %564  ;;  %v85_v60 = vpack.c.bf16 %v78_v56, %v77_v53  ;;  %v79_v61 = vsel %vm39_vm2, %v649_v17, %v408_v54  ;;  %v410_v62 = vadd.f32 -1.0, %v563_v55 }
  0x1d   :  { %516 = vmatprep.subr.bf16.mxu0 %v549_v37  ;;  %v567_v63 = vpop.eup %566  ;;  %v80_v0 = vsel %vm40_vm3, %v651_v18, %v409_v57  ;;  %v411_v1 = vadd.f32 -1.0, %v565_v59  ;;  %v434_v18 = vld [vmem:[%s743_s4] ss:$0 sm:$0xff] }
  0x1e   :  { %v569_v2 = vpop.eup %568  ;;  %518 = vmatprep.mubr.bf16.mxu0 %v85_v60  ;;  %v86_v3 = vpack.c.bf16 %v80_v0, %v79_v61  ;;  %v81_v4 = vsel %vm41_vm4, %v666_v28, %v410_v62  ;;  %v412_v5 = vadd.f32 -1.0, %v567_v63 }
  0x1f   :  { %493 = vmatpush3.bf16.msra.mxu1 %v548_v35  ;;  %v82_v6 = vsel %vm42_vm5, %v668_v29, %v411_v1  ;;  %v413_v7 = vadd.f32 -1.0, %v569_v2 }
  0x20   :  { %517 = vmatpush3.bf16.msra.mxu0 %v549_v37  ;;  %v87_v8 = vpack.c.bf16 %v82_v6, %v81_v4  ;;  %v83_v9 = vsel %vm43_vm6, %v673_v33, %v412_v5 }
  0x21   :  { %v84_v10 = vsel %vm44_vm7, %v675_v34, %v413_v7 }
  0x22   :  { %495 = vmatmul.mubr.bf16.vlgmr.msra.gmra.mrb[0].mxu1 %v551_v45  ;;  %v88_v11 = vpack.c.bf16 %v84_v10, %v83_v9 }
  0x23   :  { %498 = vmatprep.mubr.bf16.mxu1 %v552_v46  ;;  %519 = vmatmul.mubr.bf16.vlgmr.msra.gmra.mrb[0].mxu0 %v86_v3 }
  0x24   :  { %522 = vmatprep.mubr.bf16.mxu0 %v87_v8 }
  0x2a   :  { %499 = vmatmul.mubr.bf16.gmra.mrb[4].mxu1 %v553_v58 }
  0x2b   :  { %523 = vmatmul.mubr.bf16.gmra.mrb[4].mxu0 %v88_v11 }
  0xf5   :  { %v496_v12 = vpop.f32.mrb[0].mxu1 }
  0xf6   :  { %v235_v13 = vpop.f32.mrb[1].mxu1  ;;  %v520_v17 = vpop.f32.mrb[0].mxu0 }
  0xf7   :  { %v497_v14 = vpop.f32.mrb[2].mxu1  ;;  %v357_v20 = vadd.f32 %v520_v17, %v496_v12  ;;  %v348_v21 = vpop.f32.mrb[1].mxu0 }
  0xf8   :  { %v238_v15 = vpop.f32.mrb[3].mxu1  ;;  %v349_v23 = vadd.f32 %v348_v21, %v235_v13  ;;  %v521_v24 = vpop.f32.mrb[2].mxu0 }
  0xf9   :  { %v388_v26 = vadd.f32 %v434_v18, %v357_v20  ;;  %v360_v27 = vadd.f32 %v521_v24, %v497_v14  ;;  %v351_v28 = vpop.f32.mrb[3].mxu0 }
  0xfa   :  { %v386_v29 = vadd.f32 %v434_v18, %v349_v23  ;;  %v352_v30 = vadd.f32 %v351_v28, %v238_v15 }
  0xfb   :  { %396 = vst [vmem:[%s744_s5 + $0x10] sm:$0xff] %v388_v26  ;;  %v389_v31 = vadd.f32 %v434_v18, %v360_v27 }
  0xfc   :  { %394 = vst [vmem:[%s744_s5] sm:$0xff] %v386_v29  ;;  %v387_v32 = vadd.f32 %v434_v18, %v352_v30 }
  0xfd   :  { %v500_v16 = vpop.f32.mrb[4].mxu1  ;;  %397 = vst [vmem:[%s744_s5 + $0x18] sm:$0xff] %v389_v31 }
  0xfe   :  { %v251_v19 = vpop.f32.mrb[5].mxu1  ;;  %395 = vst [vmem:[%s744_s5 + $0x8] sm:$0xff] %v387_v32  ;;  %v524_v33 = vpop.f32.mrb[4].mxu0 }
  0xff   :  { %v501_v22 = vpop.f32.mrb[6].mxu1  ;;  %v373_v34 = vadd.f32 %v524_v33, %v500_v16  ;;  %v364_v35 = vpop.f32.mrb[5].mxu0 }
 0x100   :  { %v254_v25 = vpop.f32.mrb[7].mxu1  ;;  %v365_v36 = vadd.f32 %v364_v35, %v251_v19  ;;  %v525_v37 = vpop.f32.mrb[6].mxu0 }
 0x101   :  { %v392_v38 = vadd.f32 %v434_v18, %v373_v34  ;;  %v376_v39 = vadd.f32 %v525_v37, %v501_v22  ;;  %v367_v40 = vpop.f32.mrb[7].mxu0 }
 0x102   :  { %v390_v41 = vadd.f32 %v434_v18, %v365_v36  ;;  %v368_v42 = vadd.f32 %v367_v40, %v254_v25 }
 0x103   :  { %400 = vst [vmem:[%s744_s5 + $0x30] sm:$0xff] %v392_v38  ;;  %v393_v43 = vadd.f32 %v434_v18, %v376_v39 }
 0x104   :  { %398 = vst [vmem:[%s744_s5 + $0x20] sm:$0xff] %v390_v41  ;;  %v391_v44 = vadd.f32 %v434_v18, %v368_v42 }
 0x105   :  { %401 = vst [vmem:[%s744_s5 + $0x38] sm:$0xff] %v393_v43 }
 0x106   :  { %399 = vst [vmem:[%s744_s5 + $0x28] sm:$0xff] %v391_v44 }

// kernel: seanet_encoder2d_forward.15
= control target key start
LH: loop header
LB: loop body
LE: loop exit
PB: predicated region body
PF: predicated region fallthrough
CT: control target
= control target key end

     0   :  { %v227_v0 = vmov 0.0   ;;  %vm228_vm0 = vmmov 0   ;;  %s285_s1 = inlined_call_operand.vmem [shape: bf16[128,128], index: 1, kind: input, shape index: {}]   ;;  %s286_s0 = inlined_call_operand.vmem [shape: bf16[16,128], index: 0, kind: input, shape index: {}]   ;;  %s287_s2 = inlined_call_operand.vmem [shape: f32[1,128], index: 2, kind: input, shape index: {}]   ;;  %s288_s3 = inlined_call_operand.vmem [shape: f32[16,128], index: 3, kind: output, shape index: {}]  }
   0x1   :  { %193 = vmatprep.subr.bf16.mxu0 %v227_v0  ;;  %v215_v1 = vld [vmem:[%s285_s1] sm:$0xff]   ;;  %209 = vmatprep.mubr.msk.bf16.mxu0 %vm228_vm0, %v227_v0  ;;  %v216_v2 = vld [vmem:[%s285_s1 + $0x8] sm:$0xff]   ;;  %v217_v3 = vld [vmem:[%s285_s1 + $0x10] sm:$0xff]  }
   0x2   :  { %194 = vmatpush3.bf16.msra.mxu0 %v215_v1  ;;  %v181_v4 = vld [vmem:[%s286_s0] sm:$0xff]   ;;  %v218_v7 = vld [vmem:[%s285_s1 + $0x18] sm:$0xff]   ;;  %v220_v13 = vld [vmem:[%s285_s1 + $0x28] sm:$0xff]  }
   0x3   :  { %195 = vmatprep.subr.bf16.mxu0 %v227_v0  ;;  %v182_v5 = vunpack.c.l.bf16 %v181_v4  ;;  %v183_v6 = vunpack.c.h.bf16 %v181_v4  ;;  %v219_v12 = vld [vmem:[%s285_s1 + $0x20] sm:$0xff]   ;;  %v221_v14 = vld [vmem:[%s285_s1 + $0x30] sm:$0xff]   ;;  %v222_v17 = vld [vmem:[%s285_s1 + $0x38] sm:$0xff]  }
   0x4   :  { %v179_v23 = vld [vmem:[%s287_s2] ss:$0 sm:$0xff] }
   0x5   :  { %v27_v8 = vmin.f32 %v182_v5, 0.0  ;;  %v28_v9 = vmin.f32 %v183_v6, 0.0  ;;  %vm25_vm1 = vcmp.gt.f32.partialorder %v182_v5, 0.0  ;;  %vm26_vm2 = vcmp.gt.f32.partialorder %v183_v6, 0.0 }
   0x6   :  { %196 = vmatpush3.bf16.msra.mxu0 %v216_v2 }
   0x7   :  { %197 = vmatprep.subr.bf16.mxu0 %v227_v0  ;;  %v29_v10 = vmul.f32 1.442695, %v27_v8  ;;  %v31_v11 = vmul.f32 1.442695, %v28_v9 }
   0x9   :  { %223 = vpow2.f32 %v29_v10 }
   0xa   :  { %198 = vmatpush3.bf16.msra.mxu0 %v217_v3  ;;  %225 = vpow2.f32 %v31_v11 }
   0xb   :  { %199 = vmatprep.subr.bf16.mxu0 %v227_v0 }
   0xe   :  { %200 = vmatpush3.bf16.msra.mxu0 %v218_v7 }
   0xf   :  { %201 = vmatprep.subr.bf16.mxu0 %v227_v0 }
  0x12   :  { %202 = vmatpush3.bf16.msra.mxu0 %v219_v12 }
  0x13   :  { %203 = vmatprep.subr.bf16.mxu0 %v227_v0  ;;  %v224_v15 = vpop.eup %223 }
  0x14   :  { %v226_v16 = vpop.eup %225  ;;  %v169_v18 = vadd.f32 -1.0, %v224_v15 }
  0x15   :  { %v170_v19 = vadd.f32 -1.0, %v226_v16 }
  0x16   :  { %204 = vmatpush3.bf16.msra.mxu0 %v220_v13  ;;  %v35_v20 = vsel %vm25_vm1, %v182_v5, %v169_v18 }
  0x17   :  { %205 = vmatprep.subr.bf16.mxu0 %v227_v0  ;;  %v36_v21 = vsel %vm26_vm2, %v183_v6, %v170_v19 }
  0x18   :  { %v37_v22 = vpack.c.bf16 %v36_v21, %v35_v20 }
  0x1a   :  { %206 = vmatpush3.bf16.msra.mxu0 %v221_v14 }
  0x1b   :  { %207 = vmatprep.subr.bf16.mxu0 %v227_v0 }
  0x1e   :  { %208 = vmatpush3.bf16.msra.mxu0 %v222_v17 }
  0x21   :  { %210 = vmatmul.mubr.bf16.vlgmr.msra.gmra.mrb[0].mxu0 %v37_v22 }
  0xf4   :  { %v138_v24 = vpop.f32.mrb[0].mxu0 }
  0xf5   :  { %v161_v25 = vadd.f32 %v179_v23, %v138_v24  ;;  %v211_v26 = vpop.f32.mrb[1].mxu0 }
  0xf6   :  { %v141_v27 = vpop.f32.mrb[2].mxu0 }
  0xf7   :  { %163 = vst [vmem:[%s288_s3] sm:$0xff] %v161_v25  ;;  %v162_v28 = vadd.f32 %v179_v23, %v141_v27  ;;  %v212_v29 = vpop.f32.mrb[3].mxu0 }
  0xf9   :  { %164 = vst [vmem:[%s288_s3 + $0x8] sm:$0xff] %v162_v28 }

// kernel: seanet_encoder2d_forward.16
= control target key start
LH: loop header
LB: loop body
LE: loop exit
PB: predicated region body
PF: predicated region fallthrough
CT: control target
= control target key end

     0   :  { %s398_s1 = inlined_call_operand.vmem [shape: bf16[256,128], index: 1, kind: input, shape index: {}]   ;;  %s399_s0 = inlined_call_operand.vmem [shape: bf16[16,256], index: 0, kind: input, shape index: {}]   ;;  %s400_s2 = inlined_call_operand.vmem [shape: f32[1,128], index: 2, kind: input, shape index: {}]   ;;  %s401_s3 = inlined_call_operand.vmem [shape: f32[16,128], index: 3, kind: output, shape index: {}]  }
   0x1   :  { %v291_v0 = vld [vmem:[%s398_s1 + $0x40] sm:$0xff]   ;;  %v293_v2 = vld [vmem:[%s398_s1 + $0x48] sm:$0xff]   ;;  %v295_v4 = vld [vmem:[%s398_s1 + $0x50] sm:$0xff]  }
   0x2   :  { %v292_v1 = vld [vmem:[%s398_s1] sm:$0xff]   ;;  %269 = vmatprep.subr.bf16.mxu0 %v291_v0  ;;  %v294_v3 = vld [vmem:[%s398_s1 + $0x8] sm:$0xff]   ;;  %v296_v5 = vld [vmem:[%s398_s1 + $0x10] sm:$0xff]  }
   0x3   :  { %270 = vmatpush3.bf16.msra.mxu0 %v292_v1  ;;  %v297_v6 = vld [vmem:[%s398_s1 + $0x58] sm:$0xff]   ;;  %v299_v8 = vld [vmem:[%s398_s1 + $0x60] sm:$0xff]   ;;  %v301_v10 = vld [vmem:[%s398_s1 + $0x68] sm:$0xff]  }
   0x4   :  { %271 = vmatprep.subr.bf16.mxu0 %v293_v2  ;;  %v298_v7 = vld [vmem:[%s398_s1 + $0x18] sm:$0xff]   ;;  %v300_v9 = vld [vmem:[%s398_s1 + $0x20] sm:$0xff]   ;;  %v22_v12 = vld [vmem:[%s399_s0 + $0x8] sm:$0xff] }
   0x5   :  { %v21_v11 = vld [vmem:[%s399_s0] sm:$0xff]  ;;  %v25_v15 = vunpack.c.l.bf16 %v22_v12  ;;  %v26_v16 = vunpack.c.h.bf16 %v22_v12  ;;  %v302_v17 = vld [vmem:[%s398_s1 + $0x28] sm:$0xff]   ;;  %v303_v20 = vld [vmem:[%s398_s1 + $0x70] sm:$0xff]  }
   0x6   :  { %v23_v13 = vunpack.c.l.bf16 %v21_v11  ;;  %v24_v14 = vunpack.c.h.bf16 %v21_v11  ;;  %v304_v27 = vld [vmem:[%s398_s1 + $0x30] sm:$0xff]   ;;  %v305_v28 = vld [vmem:[%s398_s1 + $0x78] sm:$0xff]   ;;  %v268_v46 = vld [vmem:[%s400_s2] ss:$0 sm:$0xff] }
   0x7   :  { %272 = vmatpush3.bf16.msra.mxu0 %v294_v3  ;;  %v33_v21 = vmin.f32 %v25_v15, 0.0  ;;  %v34_v22 = vmin.f32 %v26_v16, 0.0  ;;  %v306_v29 = vld [vmem:[%s398_s1 + $0x38] sm:$0xff]   ;;  %vm30_vm1 = vcmp.gt.f32.partialorder %v26_v16, 0.0  ;;  %vm29_vm3 = vcmp.gt.f32.partialorder %v25_v15, 0.0 }
   0x8   :  { %273 = vmatprep.subr.bf16.mxu0 %v295_v4  ;;  %v31_v18 = vmin.f32 %v23_v13, 0.0  ;;  %v32_v19 = vmin.f32 %v24_v14, 0.0  ;;  %vm28_vm0 = vcmp.gt.f32.partialorder %v24_v14, 0.0  ;;  %vm27_vm2 = vcmp.gt.f32.partialorder %v23_v13, 0.0 }
   0x9   :  { %v39_v25 = vmul.f32 1.442695, %v33_v21  ;;  %v41_v26 = vmul.f32 1.442695, %v34_v22 }
   0xa   :  { %v35_v23 = vmul.f32 1.442695, %v31_v18  ;;  %v37_v24 = vmul.f32 1.442695, %v32_v19 }
   0xb   :  { %274 = vmatpush3.bf16.msra.mxu0 %v296_v5 }
   0xc   :  { %275 = vmatprep.subr.bf16.mxu0 %v297_v6  ;;  %307 = vpow2.f32 %v37_v24 }
   0xd   :  { %309 = vpow2.f32 %v41_v26 }
   0xe   :  { %311 = vpow2.f32 %v35_v23 }
   0xf   :  { %276 = vmatpush3.bf16.msra.mxu0 %v298_v7  ;;  %313 = vpow2.f32 %v39_v25 }
  0x10   :  { %277 = vmatprep.subr.bf16.mxu0 %v299_v8 }
  0x13   :  { %278 = vmatpush3.bf16.msra.mxu0 %v300_v9 }
  0x14   :  { %279 = vmatprep.subr.bf16.mxu0 %v301_v10 }
  0x16   :  { %v308_v30 = vpop.eup %307 }
  0x17   :  { %280 = vmatpush3.bf16.msra.mxu0 %v302_v17  ;;  %v310_v31 = vpop.eup %309  ;;  %v249_v32 = vadd.f32 -1.0, %v308_v30 }
  0x18   :  { %281 = vmatprep.subr.bf16.mxu0 %v303_v20  ;;  %v312_v33 = vpop.eup %311  ;;  %v251_v34 = vadd.f32 -1.0, %v310_v31 }
  0x19   :  { %v314_v35 = vpop.eup %313  ;;  %v48_v36 = vsel %vm28_vm0, %v24_v14, %v249_v32  ;;  %v248_v37 = vadd.f32 -1.0, %v312_v33 }
  0x1a   :  { %v50_v38 = vsel %vm30_vm1, %v26_v16, %v251_v34  ;;  %v250_v39 = vadd.f32 -1.0, %v314_v35 }
  0x1b   :  { %282 = vmatpush3.bf16.msra.mxu0 %v304_v27  ;;  %v52_v40 = vpack.c.bf16 %v50_v38, %v48_v36  ;;  %v47_v41 = vsel %vm27_vm2, %v23_v13, %v248_v37 }
  0x1c   :  { %283 = vmatprep.subr.bf16.mxu0 %v305_v28  ;;  %v49_v42 = vsel %vm29_vm3, %v25_v15, %v250_v39 }
  0x1d   :  { %215 = vmatprep.mubr.bf16.mxu0 %v52_v40  ;;  %v51_v43 = vpack.c.bf16 %v49_v42, %v47_v41 }
  0x1f   :  { %284 = vmatpush3.bf16.msra.mxu0 %v306_v29 }
  0x22   :  { %216 = vmatmul.mubr.bf16.vlgmr.msra.gmra.mrb[0].mxu0 %v51_v43 }
  0xf5   :  { %v285_v44 = vpop.f32.mrb[0].mxu0 }
  0xf6   :  { %v286_v45 = vpop.f32.mrb[1].mxu0 }
  0xf7   :  { %v287_v47 = vadd.f32 %v286_v45, %v285_v44  ;;  %v288_v48 = vpop.f32.mrb[2].mxu0 }
  0xf8   :  { %v289_v49 = vpop.f32.mrb[3].mxu0 }
  0xf9   :  { %v240_v50 = vadd.f32 %v287_v47, %v268_v46  ;;  %v290_v51 = vadd.f32 %v289_v49, %v288_v48 }
  0xfb   :  { %242 = vst [vmem:[%s401_s3] sm:$0xff] %v240_v50  ;;  %v241_v52 = vadd.f32 %v290_v51, %v268_v46 }
  0xfd   :  { %243 = vst [vmem:[%s401_s3 + $0x8] sm:$0xff] %v241_v52 }

// kernel: seanet_encoder2d_forward.17
= control target key start
LH: loop header
LB: loop body
LE: loop exit
PB: predicated region body
PF: predicated region fallthrough
CT: control target
= control target key end

     0   :  { %v376_v0 = vmov 0.0   ;;  %vm377_vm0 = vmmov 0   ;;  %s471_s3 = inlined_call_operand.vmem [shape: bf16[128,128], index: 3, kind: input, shape index: {}]   ;;  %s472_s2 = inlined_call_operand.vmem [shape: bf16[128,128], index: 2, kind: input, shape index: {}]   ;;  %s473_s0 = inlined_call_operand.vmem [shape: bf16[16,128], index: 0, kind: input, shape index: {}]   ;;  %s474_s1 = inlined_call_operand.vmem [shape: bf16[16,128], index: 1, kind: input, shape index: {}]   ;;  %s475_s4 = inlined_call_operand.vmem [shape: f32[1,128], index: 4, kind: input, shape index: {}]   ;;  %s476_s5 = inlined_call_operand.vmem [shape: f32[16,128], index: 5, kind: output, shape index: {}]  }
   0x1   :  { %313 = vmatprep.subr.bf16.mxu0 %v376_v0  ;;  %333 = vmatprep.subr.bf16.mxu1 %v376_v0  ;;  %v355_v1 = vld [vmem:[%s471_s3] sm:$0xff]   ;;  %v357_v3 = vld [vmem:[%s471_s3 + $0x8] sm:$0xff]   ;;  %v359_v5 = vld [vmem:[%s471_s3 + $0x10] sm:$0xff]  }
   0x2   :  { %v356_v2 = vld [vmem:[%s472_s2] sm:$0xff]   ;;  %329 = vmatprep.mubr.msk.bf16.mxu0 %vm377_vm0, %v376_v0  ;;  %349 = vmatprep.mubr.msk.bf16.mxu1 %vm377_vm0, %v376_v0  ;;  %v358_v4 = vld [vmem:[%s472_s2 + $0x8] sm:$0xff]   ;;  %v360_v6 = vld [vmem:[%s472_s2 + $0x10] sm:$0xff]  }
   0x3   :  { %314 = vmatpush3.bf16.msra.mxu0 %v355_v1  ;;  %334 = vmatpush3.bf16.msra.mxu1 %v356_v2  ;;  %v361_v7 = vld [vmem:[%s471_s3 + $0x18] sm:$0xff]   ;;  %v363_v9 = vld [vmem:[%s471_s3 + $0x20] sm:$0xff]   ;;  %v365_v12 = vld [vmem:[%s471_s3 + $0x28] sm:$0xff]  }
   0x4   :  { %315 = vmatprep.subr.bf16.mxu0 %v376_v0  ;;  %335 = vmatprep.subr.bf16.mxu1 %v376_v0  ;;  %v362_v8 = vld [vmem:[%s472_s2 + $0x18] sm:$0xff]   ;;  %v364_v10 = vld [vmem:[%s472_s2 + $0x20] sm:$0xff]   ;;  %v366_v15 = vld [vmem:[%s472_s2 + $0x28] sm:$0xff]  }
   0x5   :  { %v292_v11 = vld [vmem:[%s473_s0] sm:$0xff]   ;;  %v367_v18 = vld [vmem:[%s471_s3 + $0x30] sm:$0xff]   ;;  %v369_v22 = vld [vmem:[%s471_s3 + $0x38] sm:$0xff]  }
   0x6   :  { %v293_v13 = vunpack.c.l.bf16 %v292_v11  ;;  %v294_v14 = vunpack.c.h.bf16 %v292_v11  ;;  %v368_v21 = vld [vmem:[%s472_s2 + $0x30] sm:$0xff]   ;;  %v370_v23 = vld [vmem:[%s472_s2 + $0x38] sm:$0xff]   ;;  %v371_v24 = vld [vmem:[%s474_s1] sm:$0xff]  }
   0x7   :  { %316 = vmatpush3.bf16.msra.mxu0 %v357_v3  ;;  %336 = vmatpush3.bf16.msra.mxu1 %v358_v4  ;;  %v290_v37 = vld [vmem:[%s475_s4] ss:$0 sm:$0xff] }
   0x8   :  { %317 = vmatprep.subr.bf16.mxu0 %v376_v0  ;;  %337 = vmatprep.subr.bf16.mxu1 %v376_v0  ;;  %v27_v16 = vmin.f32 %v293_v13, 0.0  ;;  %v28_v17 = vmin.f32 %v294_v14, 0.0  ;;  %vm25_vm1 = vcmp.gt.f32.partialorder %v293_v13, 0.0  ;;  %vm26_vm2 = vcmp.gt.f32.partialorder %v294_v14, 0.0 }
   0xa   :  { %v29_v19 = vmul.f32 1.442695, %v27_v16  ;;  %v31_v20 = vmul.f32 1.442695, %v28_v17 }
   0xb   :  { %318 = vmatpush3.bf16.msra.mxu0 %v359_v5  ;;  %338 = vmatpush3.bf16.msra.mxu1 %v360_v6 }
   0xc   :  { %319 = vmatprep.subr.bf16.mxu0 %v376_v0  ;;  %339 = vmatprep.subr.bf16.mxu1 %v376_v0  ;;  %372 = vpow2.f32 %v29_v19 }
   0xd   :  { %374 = vpow2.f32 %v31_v20 }
   0xf   :  { %320 = vmatpush3.bf16.msra.mxu0 %v361_v7  ;;  %340 = vmatpush3.bf16.msra.mxu1 %v362_v8 }
  0x10   :  { %321 = vmatprep.subr.bf16.mxu0 %v376_v0  ;;  %341 = vmatprep.subr.bf16.mxu1 %v376_v0 }
  0x13   :  { %322 = vmatpush3.bf16.msra.mxu0 %v363_v9  ;;  %342 = vmatpush3.bf16.msra.mxu1 %v364_v10 }
  0x14   :  { %323 = vmatprep.subr.bf16.mxu0 %v376_v0  ;;  %343 = vmatprep.subr.bf16.mxu1 %v376_v0 }
  0x16   :  { %v373_v25 = vpop.eup %372 }
  0x17   :  { %324 = vmatpush3.bf16.msra.mxu0 %v365_v12  ;;  %344 = vmatpush3.bf16.msra.mxu1 %v366_v15  ;;  %v375_v26 = vpop.eup %374  ;;  %v271_v27 = vadd.f32 -1.0, %v373_v25 }
  0x18   :  { %325 = vmatprep.subr.bf16.mxu0 %v376_v0  ;;  %345 = vmatprep.subr.bf16.mxu1 %v376_v0  ;;  %v272_v28 = vadd.f32 -1.0, %v375_v26 }
  0x19   :  { %v35_v29 = vsel %vm25_vm1, %v293_v13, %v271_v27 }
  0x1a   :  { %v36_v30 = vsel %vm26_vm2, %v294_v14, %v272_v28 }
  0x1b   :  { %326 = vmatpush3.bf16.msra.mxu0 %v367_v18  ;;  %346 = vmatpush3.bf16.msra.mxu1 %v368_v21  ;;  %v37_v31 = vpack.c.bf16 %v36_v30, %v35_v29 }
  0x1c   :  { %327 = vmatprep.subr.bf16.mxu0 %v376_v0  ;;  %347 = vmatprep.subr.bf16.mxu1 %v376_v0 }
  0x1f   :  { %328 = vmatpush3.bf16.msra.mxu0 %v369_v22  ;;  %348 = vmatpush3.bf16.msra.mxu1 %v370_v23 }
  0x22   :  { %330 = vmatmul.mubr.bf16.vlgmr.msra.gmra.mrb[0].mxu0 %v371_v24  ;;  %350 = vmatmul.mubr.bf16.vlgmr.msra.gmra.mrb[0].mxu1 %v37_v31 }
  0xf5   :  { %v160_v32 = vpop.f32.mrb[0].mxu0  ;;  %v249_v36 = vpop.f32.mrb[0].mxu1 }
  0xf6   :  { %v331_v33 = vpop.f32.mrb[1].mxu0  ;;  %v250_v38 = vadd.f32 %v249_v36, %v160_v32  ;;  %v351_v39 = vpop.f32.mrb[1].mxu1 }
  0xf7   :  { %v163_v34 = vpop.f32.mrb[2].mxu0  ;;  %v252_v40 = vpop.f32.mrb[2].mxu1 }
  0xf8   :  { %v332_v35 = vpop.f32.mrb[3].mxu0  ;;  %v263_v41 = vadd.f32 %v290_v37, %v250_v38  ;;  %v253_v42 = vadd.f32 %v252_v40, %v163_v34  ;;  %v352_v43 = vpop.f32.mrb[3].mxu1 }
  0xfa   :  { %265 = vst [vmem:[%s476_s5] sm:$0xff] %v263_v41  ;;  %v264_v44 = vadd.f32 %v290_v37, %v253_v42 }
  0xfc   :  { %266 = vst [vmem:[%s476_s5 + $0x8] sm:$0xff] %v264_v44 }

// kernel: seanet_encoder2d_forward.18
= control target key start
LH: loop header
LB: loop body
LE: loop exit
PB: predicated region body
PF: predicated region fallthrough
CT: control target
= control target key end

     0   :  { %v204_v0 = vmov 0.0   ;;  %vm205_vm0 = vmmov 0   ;;  %s259_s1 = inlined_call_operand.vmem [shape: bf16[128,128], index: 1, kind: input, shape index: {}]   ;;  %s260_s0 = inlined_call_operand.vmem [shape: bf16[8,128], index: 0, kind: input, shape index: {}]   ;;  %s261_s2 = inlined_call_operand.vmem [shape: f32[1,128], index: 2, kind: input, shape index: {}]   ;;  %s262_s3 = inlined_call_operand.vmem [shape: f32[8,128], index: 3, kind: output, shape index: {}]  }
   0x1   :  { %172 = vmatprep.subr.bf16.mxu0 %v204_v0  ;;  %v194_v1 = vld [vmem:[%s259_s1] sm:$0xff]   ;;  %188 = vmatprep.mubr.msk.bf16.mxu0 %vm205_vm0, %v204_v0  ;;  %v195_v2 = vld [vmem:[%s259_s1 + $0x8] sm:$0xff]   ;;  %v196_v3 = vld [vmem:[%s259_s1 + $0x10] sm:$0xff]  }
   0x2   :  { %173 = vmatpush3.bf16.msra.mxu0 %v194_v1  ;;  %v20_v4 = vld [vmem:[%s260_s0] sm:$0xf]  ;;  %v197_v6 = vld [vmem:[%s259_s1 + $0x18] sm:$0xff]   ;;  %v199_v10 = vld [vmem:[%s259_s1 + $0x28] sm:$0xff]  }
   0x3   :  { %174 = vmatprep.subr.bf16.mxu0 %v204_v0  ;;  %v21_v5 = vunpack.c.l.bf16 %v20_v4  ;;  %v198_v9 = vld [vmem:[%s259_s1 + $0x20] sm:$0xff]   ;;  %v200_v11 = vld [vmem:[%s259_s1 + $0x30] sm:$0xff]   ;;  %v201_v13 = vld [vmem:[%s259_s1 + $0x38] sm:$0xff]  }
   0x4   :  { %v162_v17 = vld [vmem:[%s261_s2] ss:$0 sm:$0xff] }
   0x5   :  { %v23_v7 = vmin.f32 %v21_v5, 0.0  ;;  %vm22_vm1 = vcmp.gt.f32.partialorder %v21_v5, 0.0 }
   0x6   :  { %175 = vmatpush3.bf16.msra.mxu0 %v195_v2 }
   0x7   :  { %176 = vmatprep.subr.bf16.mxu0 %v204_v0  ;;  %v24_v8 = vmul.f32 1.442695, %v23_v7 }
   0x9   :  { %202 = vpow2.f32 %v24_v8 }
   0xa   :  { %177 = vmatpush3.bf16.msra.mxu0 %v196_v3 }
   0xb   :  { %178 = vmatprep.subr.bf16.mxu0 %v204_v0 }
   0xe   :  { %179 = vmatpush3.bf16.msra.mxu0 %v197_v6 }
   0xf   :  { %180 = vmatprep.subr.bf16.mxu0 %v204_v0 }
  0x12   :  { %181 = vmatpush3.bf16.msra.mxu0 %v198_v9 }
  0x13   :  { %182 = vmatprep.subr.bf16.mxu0 %v204_v0  ;;  %v203_v12 = vpop.eup %202 }
  0x14   :  { %v153_v14 = vadd.f32 -1.0, %v203_v12 }
  0x16   :  { %183 = vmatpush3.bf16.msra.mxu0 %v199_v10  ;;  %v27_v15 = vsel %vm22_vm1, %v21_v5, %v153_v14 }
  0x17   :  { %184 = vmatprep.subr.bf16.mxu0 %v204_v0  ;;  %v28_v16 = vpack.c.bf16 %v27_v15, %v27_v15 }
  0x1a   :  { %185 = vmatpush3.bf16.msra.mxu0 %v200_v11 }
  0x1b   :  { %186 = vmatprep.subr.bf16.mxu0 %v204_v0 }
  0x1e   :  { %187 = vmatpush3.bf16.msra.mxu0 %v201_v13 }
  0x21   :  { %189 = vmatmul.mubr.bf16.vlgmr.msra.gmra.mrb[0].mxu0 %v28_v16 }
  0xf4   :  { %v128_v18 = vpop.f32.mrb[0].mxu0 }
  0xf5   :  { %v147_v19 = vadd.f32 %v162_v17, %v128_v18  ;;  %v190_v20 = vpop.f32.mrb[1].mxu0 }
  0xf6   :  { %v131_v21 = vpop.f32.mrb[2].mxu0 }
  0xf7   :  { %148 = vst [vmem:[%s262_s3] sm:$0xff] %v147_v19  ;;  %v191_v22 = vpop.f32.mrb[3].mxu0 }

// kernel: seanet_encoder2d_forward.19
= control target key start
LH: loop header
LB: loop body
LE: loop exit
PB: predicated region body
PF: predicated region fallthrough
CT: control target
= control target key end

     0   :  { %v193_v0 = vmov 0.0   ;;  %vm194_vm0 = vmmov 0   ;;  %s248_s1 = inlined_call_operand.vmem [shape: bf16[128,128], index: 1, kind: input, shape index: {}]   ;;  %s249_s0 = inlined_call_operand.vmem [shape: bf16[8,128], index: 0, kind: input, shape index: {}]   ;;  %s250_s2 = inlined_call_operand.vmem [shape: f32[1,128], index: 2, kind: input, shape index: {}]   ;;  %s251_s3 = inlined_call_operand.vmem [shape: f32[8,128], index: 3, kind: output, shape index: {}]  }
   0x1   :  { %163 = vmatprep.subr.bf16.mxu0 %v193_v0  ;;  %v185_v1 = vld [vmem:[%s248_s1] sm:$0xff]   ;;  %179 = vmatprep.mubr.msk.bf16.mxu0 %vm194_vm0, %v193_v0  ;;  %v186_v2 = vld [vmem:[%s248_s1 + $0x8] sm:$0xff]   ;;  %v187_v3 = vld [vmem:[%s248_s1 + $0x10] sm:$0xff]  }
   0x2   :  { %164 = vmatpush3.bf16.msra.mxu0 %v185_v1  ;;  %v188_v4 = vld [vmem:[%s248_s1 + $0x18] sm:$0xff]   ;;  %v189_v5 = vld [vmem:[%s248_s1 + $0x20] sm:$0xff]   ;;  %v190_v6 = vld [vmem:[%s248_s1 + $0x28] sm:$0xff]  }
   0x3   :  { %165 = vmatprep.subr.bf16.mxu0 %v193_v0  ;;  %v191_v7 = vld [vmem:[%s248_s1 + $0x30] sm:$0xff]   ;;  %v192_v8 = vld [vmem:[%s248_s1 + $0x38] sm:$0xff]   ;;  %v20_v9 = vld [vmem:[%s249_s0] sm:$0xf] }
   0x4   :  { %v153_v10 = vld [vmem:[%s250_s2] ss:$0 sm:$0xff] }
   0x6   :  { %166 = vmatpush3.bf16.msra.mxu0 %v186_v2 }
   0x7   :  { %167 = vmatprep.subr.bf16.mxu0 %v193_v0 }
   0xa   :  { %168 = vmatpush3.bf16.msra.mxu0 %v187_v3 }
   0xb   :  { %169 = vmatprep.subr.bf16.mxu0 %v193_v0 }
   0xe   :  { %170 = vmatpush3.bf16.msra.mxu0 %v188_v4 }
   0xf   :  { %171 = vmatprep.subr.bf16.mxu0 %v193_v0 }
  0x12   :  { %172 = vmatpush3.bf16.msra.mxu0 %v189_v5 }
  0x13   :  { %173 = vmatprep.subr.bf16.mxu0 %v193_v0 }
  0x16   :  { %174 = vmatpush3.bf16.msra.mxu0 %v190_v6 }
  0x17   :  { %175 = vmatprep.subr.bf16.mxu0 %v193_v0 }
  0x1a   :  { %176 = vmatpush3.bf16.msra.mxu0 %v191_v7 }
  0x1b   :  { %177 = vmatprep.subr.bf16.mxu0 %v193_v0 }
  0x1e   :  { %178 = vmatpush3.bf16.msra.mxu0 %v192_v8 }
  0x21   :  { %180 = vmatmul.mubr.bf16.vlgmr.msra.gmra.mrb[0].mxu0 %v20_v9 }
  0xf4   :  { %v120_v11 = vpop.f32.mrb[0].mxu0 }
  0xf5   :  { %v139_v12 = vadd.f32 %v153_v10, %v120_v11  ;;  %v181_v13 = vpop.f32.mrb[1].mxu0 }
  0xf6   :  { %v123_v14 = vpop.f32.mrb[2].mxu0 }
  0xf7   :  { %140 = vst [vmem:[%s251_s3] sm:$0xff] %v139_v12  ;;  %v182_v15 = vpop.f32.mrb[3].mxu0 }

// kernel: seanet_encoder2d_forward.20
= control target key start
LH: loop header
LB: loop body
LE: loop exit
PB: predicated region body
PF: predicated region fallthrough
CT: control target
= control target key end

     0   :  { %s408_s9 = smov 0   ;;  %s440_s0 = inlined_call_operand.vmem [shape: f32[4,2,128], index: 0, kind: input, shape index: {}]   ;;  %s441_s1 = inlined_call_operand.vmem [shape: f32[32,128], index: 1, kind: input, shape index: {}]   ;;  %s442_s2 = inlined_call_operand.vmem [shape: f32[4,2,32], index: 2, kind: output, shape index: {}]  }
   0x1 LB: > { %s321_s10 = sadd.s32 4294967295, %s384_s9   ;;  %p325_p0 = scmp.ge.s32.totalorder %s384_s9, 1  ;;  %s384_s9 = sphi %s408_s9, %s12_s9  }
   0x2   : > { %p111_p1 = scmp.lt.s32.totalorder %s384_s9, 5 }
   0x4   : > { %p112_p2 = pnand %p325_p0, %p111_p1 }
   0x5   : > { %p131_p3 = scmp.lt.s32.totalorder (!%p112_p2), %s321_s10, 3  ;;  %p328_p4 = scmp.ne.s32.totalorder (!%p112_p2), %s321_s10, 0 }
   0x6   : > { %115 = sbr.rel (%p112_p2) target bundleno = 734 (0x2de), region = 28 }
   0xd   : > { %s132_s11 = scalar_select %p131_p3, %s321_s10, 3 }
   0xe   : > { %142 = sbr.rel (%p328_p4) target bundleno = 21 (0x15), region = 32  ;;  %vm143_vm0 = vcmask (!%p328_p4), 254976   ;;  %v386_v0 = vmov (!%p328_p4), 0.0  }
   0xf   : > { %s326_s12 = sshll.u32 %s132_s11, 1  ;;  %144 = vst.msk [vmem:[#allocation2] sm:$0x3] (!%p328_p4), %vm143_vm0, %v386_v0  ;;  %145 = vst.msk [vmem:[#allocation3] sm:$0x3] (!%p328_p4), %vm143_vm0, %v386_v0 }
  0x10   : > { %s134_s15 = scalar_lea.vmem %s440_s0, %s326_s12  ;;  %s422_s18 = scalar_lea.vmem %s442_s2, %s326_s12 }
  0x15 PF: > { %v148_v1 = vld [vmem:[%s441_s1] sm:$0xff]  ;;  %v149_v2 = vld [vmem:[%s441_s1 + $0x8] sm:$0xff]  ;;  %v150_v3 = vld [vmem:[%s441_s1 + $0x10] sm:$0xff]  ;;  %v387_v4 = vmov 0.0|0.0   ;;  %vm388_vm1 = vmmov 0   ;;  %v389_v7 = vmov 0.0  }
  0x16   : > { %349 = vmatprep.subr.bf16.mxu0 %v387_v4  ;;  %v350_v5 = vpack.c.bf16 %v149_v2, %v148_v1  ;;  %v151_v6 = vld [vmem:[%s441_s1 + $0x18] sm:$0xff]  ;;  %346 = vmatprep.mubr.msk.f32.mxu0 %vm388_vm1, %v389_v7  ;;  %v146_v9 = vld [vmem:[#allocation2] sm:$0x3]  ;;  %vm152_vm2 = vcmask 261120   ;;  %s390_s27 = smov 64   ;;  %s391_s28 = smov 32  }
  0x17   : > { %v353_v8 = vpack.c.bf16 %v151_v6, %v150_v3  ;;  %v147_v10 = vld [vmem:[%s134_s15] sm:$0x3]  ;;  %v234_v15 = vld [vmem:[#allocation3] sm:$0x3]  ;;  %s392_s29 = smov 96   ;;  %vm260_vm3 = vcmask 254976  }
  0x18   : > { %351 = vmatpush3.bf16.msra.mxu0 %v350_v5 }
  0x19   : > { %352 = vmatprep.subr.bf16.mxu0 %v387_v4 }
  0x1c   : > { %354 = vmatpush3.bf16.msra.mxu0 %v353_v8 }
  0x1f   : > { %347 = vmatmul.mubr.msk.f32.vlgmr.msra.gmra.mrb[0].mxu0 %vm152_vm2, %v146_v9 }
  0xf2   : > { %v222_v11 = vpop.f32.mrb[0].mxu0 }
  0xf3   : > { %v226_v12 = vadd.f32 %v222_v11, %v147_v10  ;;  %v348_v13 = vpop.f32.mrb[1].mxu0 }
  0xf5   : > { %370 = vtanh.f32 %v226_v12  ;;  %v330_v16 = vmul.f32 -1.442695, %v226_v12 }
  0xf7   : > { %372 = vpow2.f32 %v330_v16 }
  0xff   : > { %v371_v14 = vpop.eup %370 }
 0x100   : > { %241 = vrot.lane.b32.xlu0 %v371_v14, %s390_s27 }
 0x101   : > { %v373_v17 = vpop.eup %372 }
 0x102   : > { %v230_v18 = vadd.f32 1.0, %v373_v17 }
 0x104   : > { %236 = vrot.lane.b32.xlu0 %v234_v15, %s391_s28  ;;  %374 = vrcp.f32 %v230_v18 }
 0x10e   : > { %v375_v19 = vpop.eup %374 }
 0x172   : > { %v242_v20 = vpop.permute.xlu0 %241 }
 0x173   : > { %v244_v21 = vmul.f32 %v375_v19, %v242_v20 }
 0x175   : > { %246 = vrot.lane.b32.xlu1 %v244_v21, %s391_s28 }
 0x176   : > { %v237_v22 = vpop.permute.xlu0 %236 }
 0x177   : > { %v239_v23 = vmul.f32 %v375_v19, %v237_v22 }
 0x1e7   : > { %v247_v24 = vpop.permute.xlu1 %246 }
 0x1e8   : > { %v249_v25 = vadd.f32 %v247_v24, %v239_v23 }
 0x1ea   : > { %376 = vtanh.f32 %v249_v25  ;;  %257 = vrot.lane.b32.xlu0 %v249_v25, %s392_s29 }
 0x1f4   : > { %v377_v26 = vpop.eup %376 }
 0x1f5   : > { %252 = vrot.lane.b32.xlu1 %v377_v26, %s390_s27 }
 0x25c   : > { %v258_v27 = vpop.permute.xlu0 %257 }
 0x25d   : > { %261 = vst.msk [vmem:[#allocation3] sm:$0x3] %vm260_vm3, %v258_v27 }
 0x267   : > { %v253_v28 = vpop.permute.xlu1 %252 }
 0x268   : > { %v255_v29 = vmul.f32 %v375_v19, %v253_v28 }
 0x26a   : > { %263 = vrot.lane.b32.xlu1 %v255_v29, %s391_s28 }
 0x2dc   : > { %v264_v30 = vpop.permute.xlu1 %263 }
 0x2dd   : > { %266 = vst.msk [vmem:[#allocation2] sm:$0x3] %vm260_vm3, %v264_v30  ;;  %267 = vst.msk [vmem:[%s422_s18] sm:$0x3] %vm260_vm3, %v264_v30 }
 0x2de PF: > { %s12_s9 = sadd.s32 1, %s384_s9  }
 0x2df   : > { %p9_p5 = scmp.ge.s32.totalorder %s12_s9, 6  }
 0x2e1   :  { %11 = sbr.rel (!%p9_p5) target bundleno = 1 (0x1), region = 62 }

// kernel: seanet_encoder2d_forward.23
= control target key start
LH: loop header
LB: loop body
LE: loop exit
PB: predicated region body
PF: predicated region fallthrough
CT: control target
= control target key end

     0   :  { %v240_v1 = vmov 0.0   ;;  %vm241_vm0 = vmmov 0   ;;  %s305_s0 = inlined_call_operand.vmem [shape: bf16[8,128], index: 0, kind: input, shape index: {}]   ;;  %s306_s1 = inlined_call_operand.vmem [shape: bf16[128,128], index: 1, kind: input, shape index: {}]   ;;  %s307_s2 = inlined_call_operand.vmem [shape: f32[1,128], index: 2, kind: input, shape index: {}]   ;;  %s308_s3 = inlined_call_operand.hbm [shape: f32[8,128], index: 3, kind: output, shape index: {}]  }
   0x1   :  { %v206_v0 = vld [vmem:[%s306_s1] sm:$0xff]   ;;  %183 = vmatprep.subr.bf16.mxu0 %v240_v1  ;;  %v207_v2 = vld [vmem:[%s306_s1 + $0x8] sm:$0xff]   ;;  %199 = vmatprep.mubr.msk.bf16.mxu0 %vm241_vm0, %v240_v1  ;;  %v208_v3 = vld [vmem:[%s306_s1 + $0x10] sm:$0xff]  }
   0x2   :  { %184 = vmatpush3.bf16.msra.mxu0 %v206_v0  ;;  %v21_v4 = vld [vmem:[%s305_s0] sm:$0xf] }
   0x3   :  { %185 = vmatprep.subr.bf16.mxu0 %v240_v1 }
   0x6   :  { %186 = vmatpush3.bf16.msra.mxu0 %v207_v2 }
   0x7   :  { %187 = vmatprep.subr.bf16.mxu0 %v240_v1 }
   0x8   :  { %8 = vsyncpa [#allocation4], 0  ;;  %v22_v5 = vunpack.c.l.bf16 %v21_v4  ;;  %v209_v6 = vld [vmem:[%s306_s1 + $0x18] sm:$0xff]   ;;  %v210_v9 = vld [vmem:[%s306_s1 + $0x20] sm:$0xff]   ;;  %s242_s4 = smov [#allocation3]  }
   0x9   :  { %v211_v10 = vld [vmem:[%s306_s1 + $0x28] sm:$0xff]   ;;  %v212_v11 = vld [vmem:[%s306_s1 + $0x30] sm:$0xff]   ;;  %v213_v13 = vld [vmem:[%s306_s1 + $0x38] sm:$0xff]   ;;  %s156_s5 = sshll.u32 %s242_s4, 4  ;;  %s157_s5 = int_to_ptr.vmem [resolvable:$true] %s156_s5 }
   0xa   :  { %188 = vmatpush3.bf16.msra.mxu0 %v208_v3  ;;  %v24_v7 = vmin.f32 %v22_v5, 0.0  ;;  %vm23_vm1 = vcmp.gt.f32.partialorder %v22_v5, 0.0  ;;  %v173_v17 = vld [vmem:[%s307_s2] ss:$0 sm:$0xff]  ;;  %s216_s1 = scalar_lea.vmem %s157_s5, 128  ;;  %p221_p1 = scmp.lt.s32.totalorder %s157_s5, %s157_s5 }
   0xb   :  { %189 = vmatprep.subr.bf16.mxu0 %v240_v1  ;;  %p217_p0 = scmp.ne.s32.totalorder %s157_s5, %s216_s1  ;;  %p222_p2 = scmp.lt.s32.totalorder %s216_s1, %s216_s1 }
   0xc   :  { %v25_v8 = vmul.f32 1.442695, %v24_v7 }
   0xd   :  { %p223_p3 = por %p222_p2, %p221_p1 }
   0xe   :  { %190 = vmatpush3.bf16.msra.mxu0 %v209_v6  ;;  %214 = vpow2.f32 %v25_v8 }
   0xf   :  { %191 = vmatprep.subr.bf16.mxu0 %v240_v1  ;;  %p224_p4 = pnand %p223_p3, %p217_p0 }
  0x12   :  { %192 = vmatpush3.bf16.msra.mxu0 %v210_v9 }
  0x13   :  { %193 = vmatprep.subr.bf16.mxu0 %v240_v1 }
  0x16   :  { %194 = vmatpush3.bf16.msra.mxu0 %v211_v10 }
  0x17   :  { %195 = vmatprep.subr.bf16.mxu0 %v240_v1 }
  0x18   :  { %v215_v12 = vpop.eup %214 }
  0x19   :  { %v164_v14 = vadd.f32 -1.0, %v215_v12 }
  0x1a   :  { %196 = vmatpush3.bf16.msra.mxu0 %v212_v11 }
  0x1b   :  { %197 = vmatprep.subr.bf16.mxu0 %v240_v1  ;;  %v28_v15 = vsel %vm23_vm1, %v22_v5, %v164_v14 }
  0x1c   :  { %v29_v16 = vpack.c.bf16 %v28_v15, %v28_v15 }
  0x1e   :  { %198 = vmatpush3.bf16.msra.mxu0 %v213_v13 }
  0x21   :  { %200 = vmatmul.mubr.bf16.vlgmr.msra.gmra.mrb[0].mxu0 %v29_v16 }
  0xf4   :  { %v129_v18 = vpop.f32.mrb[0].mxu0 }
  0xf5   :  { %v148_v19 = vadd.f32 %v173_v17, %v129_v18  ;;  %v201_v20 = vpop.f32.mrb[1].mxu0 }
  0xf6   :  { %v132_v21 = vpop.f32.mrb[2].mxu0 }
  0xf7   :  { %149 = vst [vmem:[#allocation3] sm:$0xff] %v148_v19  ;;  %v202_v22 = vpop.f32.mrb[3].mxu0 }
  0xf8   :  { %227 = shalt.err (!%p224_p4)
}
  0xf9   :  { %s228_s2 = scalar_lea.hbm %s308_s3, 128 }
  0xfa   :  { %p229_p5 = scmp.ne.s32.totalorder %s308_s3, %s228_s2  ;;  %p232_p6 = scmp.lt.u32.totalorder %s228_s2, %s308_s3 }
  0xfc   :  { %p234_p7 = pnand %p232_p6, %p229_p5 }
  0xfe   :  { %237 = shalt.err (!%p234_p7)
}
  0xff   :  { %159 = dma.vmem_to_hbm [thread:$0]  %s157_s5, 128, %s308_s3, [#allocation4]  }
 0x100   :  { %238 = dma.done.wait [#allocation4], 128  }
 0x101   :  { %239 = vsyncadd [#allocation4], 4294967168 }
 0x102   :  { %163 = vsyncpa [#allocation4], 1 }

</bundles_post_ra>
